<compile_context>
chip_gen: v7x
topology: tpu7x:2x2x1
jax: 0.10.0
libtpu: 0.0.40
codegen_flags: <defaults>
</compile_context>

<pallas_src>
import functools

import numpy as np

import jax
import jax.numpy as jnp
from jax.experimental import pallas as pl
from jax.experimental.pallas import tpu as pltpu


C_PAD = 128  # lane-dense padded channel dimension (in/hidden/out all <= 128)
NUM_LAYERS = 3


def _round_up(x, m):
    return (x + m - 1) // m * m


def _pad_to(a, rows, cols):
    return jnp.pad(a, ((0, rows - a.shape[0]), (0, cols - a.shape[1])))


# ----------------------------- fused Pallas kernel ---------------------------
def _gcn_fused_kernel(kidx_ref, kcnt_ref,          # scalar-prefetch (SMEM)
                      a_ref, xw1_ref, w_ref, b_ref,  # inputs
                      o_ref,                         # output
                      acc_ref, xw_ref,               # VMEM scratch
                      *, tm, tk, n_pad, max_k, num_layers):
    layer = pl.program_id(0)   # sequential layer axis
    tile = pl.program_id(1)    # node / row-tile axis
    j = pl.program_id(2)       # compacted nonzero k-block axis

    # ---- start of a (layer, row-tile): zero the f32 accumulator -------------
    @pl.when(j == 0)
    def _():
        acc_ref[...] = jnp.zeros_like(acc_ref)

    # ---- partial aggregation: A[t, kblk] @ XW[kblk]  (skip padded k steps) ---
    @pl.when(j < kcnt_ref[tile])
    def _():
        kblk = kidx_ref[tile * max_k + j]
        col0 = pl.multiple_of(kblk * tk, tk)

        @pl.when(layer == 0)            # layer 0: XW1 comes in as an input
        def _():
            acc_ref[...] += jnp.dot(a_ref[...],
                                    xw1_ref[pl.ds(col0, tk), :],
                                    preferred_element_type=jnp.float32)

        @pl.when(layer > 0)             # layers >0: XW from the ping-pong buffer
        def _():
            src0 = pl.multiple_of((layer % 2) * n_pad + col0, tk)
            acc_ref[...] += jnp.dot(a_ref[...],
                                    xw_ref[pl.ds(src0, tk), :],
                                    preferred_element_type=jnp.float32)

    # ---- finalize on the last k step -----------------------------------------
    @pl.when(j == max_k - 1)
    def _():
        h = acc_ref[...] + b_ref[0]     # (1, C) bias broadcast, f32

        @pl.when(layer < num_layers - 1)   # hidden layers: ReLU + next-layer XW
        def _():
            hr = jnp.maximum(h, 0.0).astype(xw_ref.dtype)          # bf16
            xw_next = jnp.dot(hr, w_ref[0],                        # bf16 MXU
                              preferred_element_type=jnp.float32)
            dst0 = pl.multiple_of(((layer + 1) % 2) * n_pad + tile * tm, tm)
            xw_ref[pl.ds(dst0, tm), :] = xw_next.astype(xw_ref.dtype)

        @pl.when(layer == num_layers - 1)  # last layer: no ReLU -> output
        def _():
            o_ref[...] = h.astype(o_ref.dtype)


def _gcn_pallas(kidx, kcnt, a_hat, xw1, w23, b_stack, *, tm, tk, n_pad, max_k,
                nnz_blocks, vmem_limit):
    num_tiles = n_pad // tm
    nw = w23.shape[0]

    kernel = functools.partial(_gcn_fused_kernel, tm=tm, tk=tk, n_pad=n_pad,
                               max_k=max_k, num_layers=NUM_LAYERS)

    flops = (2 * NUM_LAYERS * nnz_blocks * tm * tk * C_PAD        # aggregation
             + 2 * (NUM_LAYERS - 1) * n_pad * C_PAD * C_PAD)      # in-kernel XW
    bytes_accessed = (NUM_LAYERS * nnz_blocks * tm * tk * 2       # A_hat blocks (bf16)
                      + n_pad * C_PAD * 2                         # XW1 (bf16)
                      + int(w23.size) * 2 + int(b_stack.size) * 4
                      + n_pad * C_PAD * 4)                        # output

    grid_spec = pltpu.PrefetchScalarGridSpec(
        num_scalar_prefetch=2,
        grid=(NUM_LAYERS, num_tiles, max_k),
        in_specs=[
            # A_hat (bf16): row tile from grid, column block from prefetch table.
            pl.BlockSpec((tm, tk),
                         lambda l, t, j, ki, kc: (t, ki[t * max_k + j])),
            # XW1 (bf16): whole padded matrix resident (constant index).
            pl.BlockSpec((n_pad, C_PAD), lambda l, t, j, ki, kc: (0, 0)),
            # W_{l+2} (bf16) for the incremental next-layer transform.
            pl.BlockSpec((1, C_PAD, C_PAD),
                         lambda l, t, j, ki, kc: (jnp.minimum(l, nw - 1), 0, 0)),
            # b_l (f32).
            pl.BlockSpec((1, 1, C_PAD), lambda l, t, j, ki, kc: (l, 0, 0)),
        ],
        out_specs=pl.BlockSpec((tm, C_PAD), lambda l, t, j, ki, kc: (t, 0)),
        scratch_shapes=[
            pltpu.VMEM((tm, C_PAD), jnp.float32),          # f32 partial-sum acc
            pltpu.VMEM((2 * n_pad, C_PAD), jnp.bfloat16),  # XW ping-pong (cur/next)
        ],
    )

    return pl.pallas_call(
        kernel,
        out_shape=jax.ShapeDtypeStruct((n_pad, C_PAD), jnp.float32),
        grid_spec=grid_spec,
        compiler_params=pltpu.CompilerParams(
            dimension_semantics=("arbitrary", "arbitrary", "arbitrary"),
            vmem_limit_bytes=int(vmem_limit),
        ),
        cost_estimate=pl.CostEstimate(flops=int(flops), transcendentals=0,
                                      bytes_accessed=int(bytes_accessed)),
    )(kidx, kcnt, a_hat, xw1, w23, b_stack)


# ------------------------------ host-side helpers ------------------------------
def _choose_tiling(n):
    """Pick (tm, tk, n_pad); small graphs keep the whole A_hat VMEM-resident."""
    if n <= 2048:                       # A_hat bf16 <= 8 MiB -> fully resident
        n_pad = _round_up(n, 128)
        return n_pad, n_pad, n_pad
    tm = tk = 256
    return tm, tk, _round_up(n, 256)


def _block_nonzero_table(adj_np, n, n_pad, tm, tk):
    """Compacted per-row-tile nonzero-column-block table for A_hat (host side)."""
    T, K = n_pad // tm, n_pad // tk
    a = np.zeros((n_pad, n_pad), dtype=bool)
    a[:n, :n] = adj_np != 0
    nz = a.reshape(T, tm, K, tk).any(axis=(1, 3))          # (T, K)
    kcnt = nz.sum(axis=1).astype(np.int32)                 # (T,)
    max_k = max(int(kcnt.max()), 1)
    kidx = np.zeros((T, max_k), dtype=np.int32)
    for t in range(T):
        idx = np.flatnonzero(nz[t]).astype(np.int32)
        if idx.size:
            kidx[t, :idx.size] = idx
            kidx[t, idx.size:] = idx[-1]    # repeat last valid index -> no extra DMA
    return kidx.reshape(-1), kcnt, max_k, int(kcnt.sum())


def _vmem_limit_bytes(tm, tk, n_pad):
    """Footprint-derived scoped-VMEM limit, capped below physical capacity."""
    need = (2 * tm * tk * 2                # A_hat blocks (bf16, double-buffered)
            + 2 * n_pad * C_PAD * 2        # XW1 resident input
            + 2 * C_PAD * C_PAD * 2 * 2    # W blocks (bf16)
            + 2 * tm * C_PAD * 4           # output blocks
            + tm * C_PAD * 4               # f32 accumulator scratch
            + 2 * n_pad * C_PAD * 2        # XW ping-pong scratch
            + 2 * 1024 * 1024)             # compiler-internal headroom
    try:
        phys = int(pltpu.get_tpu_info().vmem_capacity_bytes)
    except Exception:
        phys = 64 * 1024 * 1024            # v7x per-TC floor
    cap = min(phys - 8 * 1024 * 1024, 110 * 1024 * 1024)
    return int(max(min(max(2 * need, 32 * 1024 * 1024), cap), need))


# ------------------------------ GCN module glue -------------------------------
def symmetric_normalize(adj, dtype=jnp.bfloat16):
    """A_hat = D^-1/2 A D^-1/2 with degrees clamped to >= 1 (DGL norm='both')."""
    deg = jnp.maximum(jnp.sum(adj, axis=1), 1.0)
    d_inv_sqrt = jax.lax.rsqrt(deg)
    return (adj * d_inv_sqrt[:, None] * d_inv_sqrt[None, :]).astype(dtype)


def xavier_uniform(key, shape, dtype=jnp.float32):
    fan_in, fan_out = shape
    limit = jnp.sqrt(6.0 / (fan_in + fan_out))
    return jax.random.uniform(key, shape, dtype, minval=-limit, maxval=limit)


def init_gcn_params(key, in_channels, hidden_channels, out_channels):
    k1, k2, k3 = jax.random.split(key, 3)
    return {
        "w1": xavier_uniform(k1, (in_channels, hidden_channels)),
        "b1": jnp.zeros((1, hidden_channels), jnp.float32),
        "w2": xavier_uniform(k2, (hidden_channels, hidden_channels)),
        "b2": jnp.zeros((1, hidden_channels), jnp.float32),
        "w3": xavier_uniform(k3, (hidden_channels, out_channels)),
        "b3": jnp.zeros((1, out_channels), jnp.float32),
    }


@functools.partial(jax.jit, static_argnames=("tm", "tk", "n_pad", "max_k",
                                              "nnz_blocks", "vmem_limit"))
def _gcn_forward_jit(params, adj, x, kidx, kcnt, *, tm, tk, n_pad, max_k,
                     nnz_blocks, vmem_limit):
    n = x.shape[0]
    c_out = params["w3"].shape[1]

    # Normalized adjacency in bf16 (dominant N^2 array), zero-padded.
    a_hat = _pad_to(symmetric_normalize(adj, dtype=jnp.bfloat16), n_pad, n_pad)

    # Hoisted first-layer feature transform: X @ W1 in f32 (XLA), stored bf16.
    xw1 = _pad_to(x.astype(jnp.float32) @ params["w1"].astype(jnp.float32),
                  n_pad, C_PAD).astype(jnp.bfloat16)

    # Per-layer weights for the in-kernel incremental XW (bf16), biases (f32).
    w23 = jnp.stack([
        _pad_to(params["w2"], C_PAD, C_PAD),
        _pad_to(params["w3"], C_PAD, C_PAD),
    ]).astype(jnp.bfloat16)
    b_stack = jnp.stack([
        _pad_to(params["b1"], 1, C_PAD),
        _pad_to(params["b2"], 1, C_PAD),
        _pad_to(params["b3"], 1, C_PAD),
    ]).astype(jnp.float32)

    out_pad = _gcn_pallas(kidx, kcnt, a_hat, xw1, w23, b_stack, tm=tm, tk=tk,
                          n_pad=n_pad, max_k=max_k, nnz_blocks=nnz_blocks,
                          vmem_limit=vmem_limit)
    return out_pad[:n, :c_out]


def gcn_forward(params, adj, x):
    """Forward pass matching GCN.forward in eval mode (dropout = identity)."""
    n, c_in = x.shape
    hidden = params["w1"].shape[1]
    c_out = params["w3"].shape[1]
    assert max(c_in, hidden, c_out) <= C_PAD

    tm, tk, n_pad = _choose_tiling(n)
    kidx, kcnt, max_k, nnz_blocks = _block_nonzero_table(
        np.asarray(jax.device_get(adj)), n, n_pad, tm, tk)
    vmem_limit = _vmem_limit_bytes(tm, tk, n_pad)

    return _gcn_forward_jit(params, adj, x, jnp.asarray(kidx), jnp.asarray(kcnt),
                            tm=tm, tk=tk, n_pad=n_pad, max_k=max_k,
                            nnz_blocks=nnz_blocks, vmem_limit=vmem_limit)


def gcn_reference(params, adj, x):
    """Pure-JAX f32 reference (same math, no Pallas) for the self-check."""
    a_hat = symmetric_normalize(adj, dtype=jnp.float32)
    h = jnp.maximum(a_hat @ (x @ params["w1"]) + params["b1"], 0.0)
    h = jnp.maximum(a_hat @ (h @ params["w2"]) + params["b2"], 0.0)
    return a_hat @ (h @ params["w3"]) + params["b3"]


# --------------------------------- main ---------------------------------------
if __name__ == "__main__":
    config = {
        "GCN_feature_channels": 16,   # out_channels
        "GCN_tag_dim": 16,            # in_channels = 16 + 16 = 32
        "GCN_hidden_channels": 32,
        "dropout": 0.5,
    }
    in_channels = config["GCN_feature_channels"] + config["GCN_tag_dim"]
    hidden_channels = config["GCN_hidden_channels"]
    out_channels = config["GCN_feature_channels"]
    num_nodes = 200   # not a multiple of the row tile -> exercises padding path

    key = jax.random.PRNGKey(0)
    k_adj, k_x, k_params = jax.random.split(key, 3)

    # Random undirected graph as dense symmetric 0/1 adjacency (~10% density).
    upper = (jax.random.uniform(k_adj, (num_nodes, num_nodes)) < 0.1).astype(jnp.float32)
    adj = jnp.triu(upper, 1)
    adj = adj + adj.T

    x = jax.random.normal(k_x, (num_nodes, in_channels), jnp.float32)
    params = init_gcn_params(k_params, in_channels, hidden_channels, out_channels)

    out = gcn_forward(params, adj, x)
    out = jax.block_until_ready(out)

    assert out.shape == (num_nodes, out_channels), out.shape
    assert out.dtype == jnp.float32

    # Self-check vs. pure-JAX f32 reference (loose tol: A_hat / XW / W in bf16).
    ref = gcn_reference(params, adj, x)
    max_err = float(jnp.max(jnp.abs(out - ref)))
    assert jnp.allclose(out, ref, rtol=2e-2, atol=2e-2), f"max abs err = {max_err}"

    print("KERNEL_OK")
</pallas_src>

<mosaic_0001>
module attributes {stable_mosaic.version = 11 : i64} {
  func.func @_gcn_fused_kernel(%arg0: i32, %arg1: i32, %arg2: i32, %arg3: memref<1xi32, #tpu.memory_space<smem>>, %arg4: memref<1xi32, #tpu.memory_space<smem>>, %arg5: memref<256x256xbf16, #tpu.memory_space<vmem>>, %arg6: memref<256x128xbf16, #tpu.memory_space<vmem>>, %arg7: memref<1x128x128xbf16, #tpu.memory_space<vmem>>, %arg8: memref<1x1x128xf32, #tpu.memory_space<vmem>>, %arg9: memref<256x128xf32, #tpu.memory_space<vmem>>, %arg10: memref<256x128xf32, #tpu.memory_space<vmem>>, %arg11: memref<512x128xbf16, #tpu.memory_space<vmem>>) attributes {dimension_semantics = [#tpu.dimension_semantics<arbitrary>, #tpu.dimension_semantics<arbitrary>, #tpu.dimension_semantics<arbitrary>], iteration_bounds = array<i64: 3, 1, 1>, scalar_prefetch = 2 : i64, scratch_operands = 2 : i64, tpu.core_type = #tpu.core_type<tc>, window_params = [{transform_indices = @transform_0, window_bounds = array<i64: 256, 256>}, {pipeline_mode = #tpu.pipeline_mode<synchronous>, transform_indices = @transform_1, window_bounds = array<i64: 256, 128>}, {transform_indices = @transform_2, window_bounds = array<i64: 1, 128, 128>}, {transform_indices = @transform_3, window_bounds = array<i64: 1, 1, 128>}, {transform_indices = @transform_4, window_bounds = array<i64: 256, 128>}]} {
    %c0_i32 = arith.constant 0 : i32
    %0 = arith.cmpi eq, %arg2, %c0_i32 : i32
    %1 = arith.extui %0 : i1 to i32
    %c0_i32_0 = arith.constant 0 : i32
    %2 = arith.cmpi ne, %1, %c0_i32_0 : i32
    scf.if %2 {
      %cst = arith.constant 0.000000e+00 : f32
      %11 = vector.broadcast %cst : f32 to vector<256x128xf32>
      %c0 = arith.constant 0 : index
      %c0_4 = arith.constant 0 : index
      %12 = vector.load %arg10[%c0, %c0_4] : memref<256x128xf32, #tpu.memory_space<vmem>>, vector<256x128xf32>
      tpu.vector_store %arg10[%c0, %c0_4], %11 {strides = array<i32>} : memref<256x128xf32, #tpu.memory_space<vmem>>, vector<256x128xf32>,
    } else {
    }
    %3 = arith.index_cast %arg1 : i32 to index
    %4 = memref.load %arg4[%3] : memref<1xi32, #tpu.memory_space<smem>>
    %5 = arith.cmpi slt, %arg2, %4 : i32
    %6 = arith.extui %5 : i1 to i32
    %c0_i32_1 = arith.constant 0 : i32
    %7 = arith.cmpi ne, %6, %c0_i32_1 : i32
    scf.if %7 {
      %c1_i32 = arith.constant 1 : i32
      %11 = arith.muli %arg1, %c1_i32 : i32
      %12 = arith.addi %11, %arg2 : i32
      %13 = arith.index_cast %12 : i32 to index
      %14 = memref.load %arg3[%13] : memref<1xi32, #tpu.memory_space<smem>>
      %c256_i32 = arith.constant 256 : i32
      %15 = arith.muli %14, %c256_i32 : i32
      %16 = tpu.assume_multiple %15, 256 : i32
      %c0_i32_4 = arith.constant 0 : i32
      %17 = arith.cmpi eq, %arg0, %c0_i32_4 : i32
      %18 = arith.extui %17 : i1 to i32
      %c0_i32_5 = arith.constant 0 : i32
      %19 = arith.cmpi ne, %18, %c0_i32_5 : i32
      scf.if %19 {
        %c0 = arith.constant 0 : index
        %c0_8 = arith.constant 0 : index
        %23 = vector.load %arg10[%c0, %c0_8] : memref<256x128xf32, #tpu.memory_space<vmem>>, vector<256x128xf32>
        %c0_9 = arith.constant 0 : index
        %c0_10 = arith.constant 0 : index
        %24 = vector.load %arg5[%c0_9, %c0_10] : memref<256x256xbf16, #tpu.memory_space<vmem>>, vector<256x256xbf16>
        %25 = arith.index_cast %16 : i32 to index
        %c0_11 = arith.constant 0 : index
        %26 = vector.load %arg6[%25, %c0_11] : memref<256x128xbf16, #tpu.memory_space<vmem>>, vector<256x128xbf16>
        %cst = arith.constant dense<0.000000e+00> : vector<256x128xf32>
        %27 = tpu.matmul %24, %26, %cst {dimension_numbers = #tpu.dot_dimension_numbers<[1], [0], [0], [1], [0, 0, 1, 1], [], []>} : vector<256x256xbf16>, vector<256x128xbf16>, vector<256x128xf32> -> vector<256x128xf32>
        %28 = arith.addf %23, %27 : vector<256x128xf32>
        %c0_12 = arith.constant 0 : index
        %c0_13 = arith.constant 0 : index
        %29 = vector.load %arg10[%c0_12, %c0_13] : memref<256x128xf32, #tpu.memory_space<vmem>>, vector<256x128xf32>
        tpu.vector_store %arg10[%c0_12, %c0_13], %28 {strides = array<i32>} : memref<256x128xf32, #tpu.memory_space<vmem>>, vector<256x128xf32>,
      } else {
      }
      %c0_i32_6 = arith.constant 0 : i32
      %20 = arith.cmpi sgt, %arg0, %c0_i32_6 : i32
      %21 = arith.extui %20 : i1 to i32
      %c0_i32_7 = arith.constant 0 : i32
      %22 = arith.cmpi ne, %21, %c0_i32_7 : i32
      scf.if %22 {
        %c2_i32 = arith.constant 2 : i32
        %c0_i32_8 = arith.constant 0 : i32
        %23 = arith.cmpi eq, %c2_i32, %c0_i32_8 : i32
        %c1_i32_9 = arith.constant 1 : i32
        %24 = arith.select %23, %c1_i32_9, %c2_i32 : i32
        %25 = arith.remsi %arg0, %24 : i32
        %c0_i32_10 = arith.constant 0 : i32
        %26 = arith.cmpi ne, %25, %c0_i32_10 : i32
        %c0_i32_11 = arith.constant 0 : i32
        %27 = arith.cmpi slt, %25, %c0_i32_11 : i32
        %c0_i32_12 = arith.constant 0 : i32
        %28 = arith.cmpi slt, %24, %c0_i32_12 : i32
        %29 = arith.xori %27, %28 : i1
        %30 = arith.andi %29, %26 : i1
        %31 = arith.addi %25, %24 : i32
        %32 = arith.select %30, %31, %25 : i32
        %c256_i32_13 = arith.constant 256 : i32
        %33 = arith.muli %32, %c256_i32_13 : i32
        %34 = arith.addi %33, %16 : i32
        %35 = tpu.assume_multiple %34, 256 : i32
        %c0 = arith.constant 0 : index
        %c0_14 = arith.constant 0 : index
        %36 = vector.load %arg10[%c0, %c0_14] : memref<256x128xf32, #tpu.memory_space<vmem>>, vector<256x128xf32>
        %c0_15 = arith.constant 0 : index
        %c0_16 = arith.constant 0 : index
        %37 = vector.load %arg5[%c0_15, %c0_16] : memref<256x256xbf16, #tpu.memory_space<vmem>>, vector<256x256xbf16>
        %38 = arith.index_cast %35 : i32 to index
        %c0_17 = arith.constant 0 : index
        %39 = vector.load %arg11[%38, %c0_17] : memref<512x128xbf16, #tpu.memory_space<vmem>>, vector<256x128xbf16>
        %cst = arith.constant dense<0.000000e+00> : vector<256x128xf32>
        %40 = tpu.matmul %37, %39, %cst {dimension_numbers = #tpu.dot_dimension_numbers<[1], [0], [0], [1], [0, 0, 1, 1], [], []>} : vector<256x256xbf16>, vector<256x128xbf16>, vector<256x128xf32> -> vector<256x128xf32>
        %41 = arith.addf %36, %40 : vector<256x128xf32>
        %c0_18 = arith.constant 0 : index
        %c0_19 = arith.constant 0 : index
        %42 = vector.load %arg10[%c0_18, %c0_19] : memref<256x128xf32, #tpu.memory_space<vmem>>, vector<256x128xf32>
        tpu.vector_store %arg10[%c0_18, %c0_19], %41 {strides = array<i32>} : memref<256x128xf32, #tpu.memory_space<vmem>>, vector<256x128xf32>,
      } else {
      }
    } else {
    }
    %c0_i32_2 = arith.constant 0 : i32
    %8 = arith.cmpi eq, %arg2, %c0_i32_2 : i32
    %9 = arith.extui %8 : i1 to i32
    %c0_i32_3 = arith.constant 0 : i32
    %10 = arith.cmpi ne, %9, %c0_i32_3 : i32
    scf.if %10 {
      %c0 = arith.constant 0 : index
      %c0_4 = arith.constant 0 : index
      %11 = vector.load %arg10[%c0, %c0_4] : memref<256x128xf32, #tpu.memory_space<vmem>>, vector<256x128xf32>
      %c0_5 = arith.constant 0 : index
      %c0_6 = arith.constant 0 : index
      %c0_7 = arith.constant 0 : index
      %12 = vector.load %arg8[%c0_5, %c0_6, %c0_7] : memref<1x1x128xf32, #tpu.memory_space<vmem>>, vector<1x1x128xf32>
      %13 = vector.shape_cast %12 : vector<1x1x128xf32> to vector<1x128xf32>
      %14 = vector.broadcast %13 : vector<1x128xf32> to vector<256x128xf32>
      %15 = arith.addf %11, %14 : vector<256x128xf32>
      %c2_i32 = arith.constant 2 : i32
      %16 = arith.cmpi slt, %arg0, %c2_i32 : i32
      %17 = arith.extui %16 : i1 to i32
      %c0_i32_8 = arith.constant 0 : i32
      %18 = arith.cmpi ne, %17, %c0_i32_8 : i32
      scf.if %18 {
        %cst = arith.constant 0.000000e+00 : f32
        %22 = vector.broadcast %cst : f32 to vector<256x128xf32>
        %23 = arith.maximumf %15, %22 : vector<256x128xf32>
        %24 = arith.truncf %23 : vector<256x128xf32> to vector<256x128xbf16>
        %c0_11 = arith.constant 0 : index
        %c0_12 = arith.constant 0 : index
        %c0_13 = arith.constant 0 : index
        %25 = vector.load %arg7[%c0_11, %c0_12, %c0_13] : memref<1x128x128xbf16, #tpu.memory_space<vmem>>, vector<1x128x128xbf16>
        %26 = vector.shape_cast %25 : vector<1x128x128xbf16> to vector<128x128xbf16>
        %cst_14 = arith.constant dense<0.000000e+00> : vector<256x128xf32>
        %27 = tpu.matmul %24, %26, %cst_14 {dimension_numbers = #tpu.dot_dimension_numbers<[1], [0], [0], [1], [0, 0, 1, 1], [], []>} : vector<256x128xbf16>, vector<128x128xbf16>, vector<256x128xf32> -> vector<256x128xf32>
        %c1_i32 = arith.constant 1 : i32
        %28 = arith.addi %arg0, %c1_i32 : i32
        %c2_i32_15 = arith.constant 2 : i32
        %c0_i32_16 = arith.constant 0 : i32
        %29 = arith.cmpi eq, %c2_i32_15, %c0_i32_16 : i32
        %c1_i32_17 = arith.constant 1 : i32
        %30 = arith.select %29, %c1_i32_17, %c2_i32_15 : i32
        %31 = arith.remsi %28, %30 : i32
        %c0_i32_18 = arith.constant 0 : i32
        %32 = arith.cmpi ne, %31, %c0_i32_18 : i32
        %c0_i32_19 = arith.constant 0 : i32
        %33 = arith.cmpi slt, %31, %c0_i32_19 : i32
        %c0_i32_20 = arith.constant 0 : i32
        %34 = arith.cmpi slt, %30, %c0_i32_20 : i32
        %35 = arith.xori %33, %34 : i1
        %36 = arith.andi %35, %32 : i1
        %37 = arith.addi %31, %30 : i32
        %38 = arith.select %36, %37, %31 : i32
        %c256_i32 = arith.constant 256 : i32
        %39 = arith.muli %38, %c256_i32 : i32
        %c256_i32_21 = arith.constant 256 : i32
        %40 = arith.muli %arg1, %c256_i32_21 : i32
        %41 = arith.addi %39, %40 : i32
        %42 = tpu.assume_multiple %41, 256 : i32
        %43 = arith.truncf %27 : vector<256x128xf32> to vector<256x128xbf16>
        %44 = arith.index_cast %42 : i32 to index
        %c0_22 = arith.constant 0 : index
        %45 = vector.load %arg11[%44, %c0_22] : memref<512x128xbf16, #tpu.memory_space<vmem>>, vector<256x128xbf16>
        tpu.vector_store %arg11[%44, %c0_22], %43 {strides = array<i32>} : memref<512x128xbf16, #tpu.memory_space<vmem>>, vector<256x128xbf16>,
      } else {
      }
      %c2_i32_9 = arith.constant 2 : i32
      %19 = arith.cmpi eq, %arg0, %c2_i32_9 : i32
      %20 = arith.extui %19 : i1 to i32
      %c0_i32_10 = arith.constant 0 : i32
      %21 = arith.cmpi ne, %20, %c0_i32_10 : i32
      scf.if %21 {
        %c0_11 = arith.constant 0 : index
        %c0_12 = arith.constant 0 : index
        %22 = vector.load %arg9[%c0_11, %c0_12] : memref<256x128xf32, #tpu.memory_space<vmem>>, vector<256x128xf32>
        tpu.vector_store %arg9[%c0_11, %c0_12], %15 {strides = array<i32>} : memref<256x128xf32, #tpu.memory_space<vmem>>, vector<256x128xf32>,
      } else {
      }
    } else {
    }
    return
  }
  func.func @transform_0(%arg0: i32, %arg1: i32, %arg2: i32, %arg3: memref<1xi32, #tpu.memory_space<smem>>, %arg4: memref<1xi32, #tpu.memory_space<smem>>) -> (i32, i32) {
    %c1_i32 = arith.constant 1 : i32
    %0 = arith.muli %arg1, %c1_i32 : i32
    %1 = arith.addi %0, %arg2 : i32
    %2 = arith.index_cast %1 : i32 to index
    %3 = memref.load %arg3[%2] : memref<1xi32, #tpu.memory_space<smem>>
    %c0_i32 = arith.constant 0 : i32
    return %arg1, %3 : i32, i32
  }
  func.func @transform_1(%arg0: i32, %arg1: i32, %arg2: i32, %arg3: memref<1xi32, #tpu.memory_space<smem>>, %arg4: memref<1xi32, #tpu.memory_space<smem>>) -> (i32, i32) {
    %c0_i32 = arith.constant 0 : i32
    %c0_i32_0 = arith.constant 0 : i32
    %c0_i32_1 = arith.constant 0 : i32
    return %c0_i32, %c0_i32_0 : i32, i32
  }
  func.func @transform_2(%arg0: i32, %arg1: i32, %arg2: i32, %arg3: memref<1xi32, #tpu.memory_space<smem>>, %arg4: memref<1xi32, #tpu.memory_space<smem>>) -> (i32, i32, i32) {
    %c1_i32 = arith.constant 1 : i32
    %0 = arith.minsi %arg0, %c1_i32 : i32
    %c0_i32 = arith.constant 0 : i32
    %c0_i32_0 = arith.constant 0 : i32
    %c0_i32_1 = arith.constant 0 : i32
    return %0, %c0_i32, %c0_i32_0 : i32, i32, i32
  }
  func.func @transform_3(%arg0: i32, %arg1: i32, %arg2: i32, %arg3: memref<1xi32, #tpu.memory_space<smem>>, %arg4: memref<1xi32, #tpu.memory_space<smem>>) -> (i32, i32, i32) {
    %c0_i32 = arith.constant 0 : i32
    %c0_i32_0 = arith.constant 0 : i32
    %c0_i32_1 = arith.constant 0 : i32
    return %arg0, %c0_i32, %c0_i32_0 : i32, i32, i32
  }
  func.func @transform_4(%arg0: i32, %arg1: i32, %arg2: i32, %arg3: memref<1xi32, #tpu.memory_space<smem>>, %arg4: memref<1xi32, #tpu.memory_space<smem>>) -> (i32, i32) {
    %c0_i32 = arith.constant 0 : i32
    %c0_i32_0 = arith.constant 0 : i32
    return %arg1, %c0_i32 : i32, i32
  }
}

</mosaic_0001>

<bundles_post_ra>
// kernel: _gcn_forward_jit.1
= control target key start
LH: loop header
LB: loop body
LE: loop exit
PB: predicated region body
PF: predicated region fallthrough
CT: control target
= control target key end

     0   :  { %s2640_s25 = smov 0   ;;  %s2642_s26 = smov 0   ;;  %s3071_s0 = inlined_call_operand.<no memory space> [shape: s32[1], index: 0, kind: input, shape index: {}]   ;;  %s3072_s1 = inlined_call_operand.<no memory space> [shape: s32[1], index: 1, kind: input, shape index: {}]   ;;  %s3073_s2 = inlined_call_operand.vmem [shape: bf16[256,256], index: 2, kind: input, shape index: {}]   ;;  %s3074_s3 = inlined_call_operand.vmem [shape: bf16[256,128], index: 3, kind: input, shape index: {}]   ;;  %s3075_s4 = inlined_call_operand.vmem [shape: bf16[2,128,128], index: 4, kind: input, shape index: {}]   ;;  %s3076_s5 = inlined_call_operand.vmem [shape: f32[3,1,128], index: 5, kind: input, shape index: {}]   ;;  %s3077_s6 = inlined_call_operand.vmem [shape: f32[256,128], index: 6, kind: output, shape index: {}]  }
   0x1   :  { %11 = sst [smem:[#allocation5]] %s3071_s0  ;;  %s2644_s27 = smov 0  }
   0x2   :  { %12 = sst [smem:[#allocation6]] %s3072_s1 }
   0x3 LB: > { %s37_s0 = sadd.s32 1, %s2592_s26  ;;  %p1965_p0 = scmp.ge.s32.totalorder %s2596_s27, 1  ;;  %s2596_s27 = sphi %s2644_s27, %s18_s27   ;;  %s2592_s26 = sphi %s2642_s26, %s3079_s26   ;;  %s2588_s25 = sphi %s2640_s25, %s3078_s25  }
   0x4   : > { %p39_p1 = scmp.ge.s32.totalorder %s37_s0, 3  ;;  %p228_p2 = scmp.lt.s32.totalorder %s2596_s27, 4 }
   0x6   : > { %s3081_s0 = smov (%p39_p1, %s37_s0), 0  ;;  %p229_p3 = pnand %p1965_p0, %p228_p2 }
   0x7   : > { %s2660_s1 = sld [smem:[#allocation5]] (!%p229_p3)  ;;  %p287_p4 = scmp.lt.s32.totalorder (!%p229_p3), %s2588_s25, 1  ;;  %v2598_v0 = vmov (!%p229_p3), 0.0  }
   0x8   : > { %232 = sbr.rel (%p229_p3) target bundleno = 973 (0x3cd), region = 36  ;;  %p296_p5 = scmp.lt.s32.totalorder (!%p229_p3), %s2588_s25, 2  ;;  %310 = vst [vmem:[#allocation2] sm:$0xff] (!%p229_p3), %v2598_v0  ;;  %311 = vst [vmem:[#allocation2 + $0x8] sm:$0xff] (!%p229_p3), %v2598_v0 }
   0x9   : > { %312 = vst [vmem:[#allocation2 + $0x10] sm:$0xff] (!%p229_p3), %v2598_v0  ;;  %313 = vst [vmem:[#allocation2 + $0x18] sm:$0xff] (!%p229_p3), %v2598_v0  ;;  %s342_s28 = sld [smem:[#allocation6]] (!%p229_p3) }
   0xa   : > { %314 = vst [vmem:[#allocation2 + $0x20] sm:$0xff] (!%p229_p3), %v2598_v0  ;;  %315 = vst [vmem:[#allocation2 + $0x28] sm:$0xff] (!%p229_p3), %v2598_v0 }
   0xb   : > { %316 = vst [vmem:[#allocation2 + $0x30] sm:$0xff] (!%p229_p3), %v2598_v0  ;;  %317 = vst [vmem:[#allocation2 + $0x38] sm:$0xff] (!%p229_p3), %v2598_v0 }
   0xc   : > { %318 = vst [vmem:[#allocation2 + $0x40] sm:$0xff] (!%p229_p3), %v2598_v0  ;;  %319 = vst [vmem:[#allocation2 + $0x48] sm:$0xff] (!%p229_p3), %v2598_v0 }
   0xd   : > { %320 = vst [vmem:[#allocation2 + $0x50] sm:$0xff] (!%p229_p3), %v2598_v0  ;;  %321 = vst [vmem:[#allocation2 + $0x58] sm:$0xff] (!%p229_p3), %v2598_v0  ;;  %s1966_s10 = sshll.u32 (!%p229_p3), %s2660_s1, 1 }
   0xe   : > { %322 = vst [vmem:[#allocation2 + $0x60] sm:$0xff] (!%p229_p3), %v2598_v0  ;;  %323 = vst [vmem:[#allocation2 + $0x68] sm:$0xff] (!%p229_p3), %v2598_v0  ;;  %p277_p6 = scmp.lt.s32.totalorder (!%p229_p3), %s1966_s10, 1 }
   0xf   : > { %324 = vst [vmem:[#allocation2 + $0x70] sm:$0xff] %v2598_v0  ;;  %325 = vst [vmem:[#allocation2 + $0x78] sm:$0xff] %v2598_v0  ;;  %s288_s29 = scalar_select %p287_p4, %s2588_s25, 1 }
  0x10   : > { %326 = vst [vmem:[#allocation2 + $0x80] sm:$0xff] %v2598_v0  ;;  %327 = vst [vmem:[#allocation2 + $0x88] sm:$0xff] %v2598_v0  ;;  %s2670_s30 = scalar_select %p296_p5, %s2588_s25, 2 }
  0x11   : > { %328 = vst [vmem:[#allocation2 + $0x90] sm:$0xff] %v2598_v0  ;;  %329 = vst [vmem:[#allocation2 + $0x98] sm:$0xff] %v2598_v0  ;;  %s3083_s29 = smov (!%p287_p4, %s288_s29), 1  ;;  %s3085_s10 = smov (!%p277_p6, %s1966_s10), 1 }
  0x12   : > { %330 = vst [vmem:[#allocation2 + $0xa0] sm:$0xff] %v2598_v0  ;;  %331 = vst [vmem:[#allocation2 + $0xa8] sm:$0xff] %v2598_v0  ;;  %s298_s9 = scalar_lea.vmem %s3076_s5, %s2670_s30  ;;  %s2084_s11 = sshll.u32 %s3083_s29, 6 }
  0x13   : > { %332 = vst [vmem:[#allocation2 + $0xb0] sm:$0xff] %v2598_v0  ;;  %333 = vst [vmem:[#allocation2 + $0xb8] sm:$0xff] %v2598_v0  ;;  %s2682_s14 = scalar_lea.vmem %s3075_s4, %s2084_s11  ;;  %s1967_s15 = sshll.u32 %s3085_s10, 2 }
  0x14   : > { %334 = vst [vmem:[#allocation2 + $0xc0] sm:$0xff] %v2598_v0  ;;  %335 = vst [vmem:[#allocation2 + $0xc8] sm:$0xff] %v2598_v0  ;;  %s2687_s18 = scalar_lea.vmem %s3073_s2, %s1967_s15  ;;  %p1974_p7 = scmp.le.s32.totalorder %s342_s28, 0 }
  0x15   : > { %336 = vst [vmem:[#allocation2 + $0xd0] sm:$0xff] %v2598_v0  ;;  %337 = vst [vmem:[#allocation2 + $0xd8] sm:$0xff] %v2598_v0  ;;  %s2689_s19 = sld [smem:[#allocation5]] (!%p1974_p7)  ;;  %p1976_p8 = scmp.ne.s32.totalorder (!%p1974_p7), %s2588_s25, 0 }
  0x16   : > { %338 = vst [vmem:[#allocation2 + $0xe0] sm:$0xff] %v2598_v0  ;;  %339 = vst [vmem:[#allocation2 + $0xe8] sm:$0xff] %v2598_v0  ;;  %346 = sbr.rel (%p1974_p7) target bundleno = 668 (0x29c), region = 44 }
  0x17   : > { %340 = vst [vmem:[#allocation2 + $0xf0] sm:$0xff] %v2598_v0  ;;  %341 = vst [vmem:[#allocation2 + $0xf8] sm:$0xff] %v2598_v0 }
  0x1b   : > { %s1975_s20 = sshll.u32 (!%p1974_p7), %s2689_s19, 8 }
  0x1d   : > { %353 = sbr.rel (%p1976_p8) target bundleno = 341 (0x155), region = 48  ;;  %s418_s21 = sshra.s32 (!%p1976_p8), %s1975_s20, 3  ;;  %v2472_v1 = vld [vmem:[%s2687_s18 + $0x4] ss:$8 sps:$4 sm:$0xff] (!%p1976_p8)   ;;  %v2470_v19 = vld [vmem:[%s2687_s18] ss:$8 sps:$4 sm:$0xff] (!%p1976_p8)  }
  0x1e   : > { %s1977_s22 = sshll.u32 (!%p1976_p8), %s418_s21, 2  ;;  %v2475_v2 = vld [vmem:[%s2687_s18 + $0x84] ss:$8 sps:$4 sm:$0xff] (!%p1976_p8)   ;;  %742 = vmatprep.mubr.bf16.mxu0 (!%p1976_p8), %v2472_v1  ;;  %v2473_v20 = vld [vmem:[%s2687_s18 + $0x80] ss:$8 sps:$4 sm:$0xff] (!%p1976_p8)  }
  0x1f   : > { %s2699_s1 = scalar_lea.vmem (!%p1976_p8), %s3074_s3, %s1977_s22  ;;  %806 = vmatprep.mubr.bf16.mxu1 (!%p1976_p8), %v2475_v2  ;;  %v2476_v21 = vld [vmem:[%s2687_s18 + $0x14] ss:$8 sps:$4 sm:$0xff] (!%p1976_p8)   ;;  %v2480_v23 = vld [vmem:[%s2687_s18 + $0x10] ss:$8 sps:$4 sm:$0xff] (!%p1976_p8)   ;;  %v2482_v25 = vld [vmem:[%s2687_s18 + $0x24] ss:$8 sps:$4 sm:$0xff] (!%p1976_p8)  }
  0x20   : > { %v2454_v3 = vld [vmem:[%s2699_s1 + $0x40] sm:$0xff] (!%p1976_p8)   ;;  %v2456_v5 = vld [vmem:[%s2699_s1 + $0x48] sm:$0xff] (!%p1976_p8)   ;;  %v2458_v7 = vld [vmem:[%s2699_s1 + $0x50] sm:$0xff] (!%p1976_p8)  }
  0x21   : > { %v2455_v4 = vld [vmem:[%s2699_s1] sm:$0xff] (!%p1976_p8)   ;;  %2085 = vmatprep.subr.bf16.mxu0 (!%p1976_p8), %v2454_v3  ;;  %2381 = vmatprep.subr.bf16.mxu1 (!%p1976_p8), %v2454_v3  ;;  %v2457_v6 = vld [vmem:[%s2699_s1 + $0x8] sm:$0xff] (!%p1976_p8)   ;;  %v2459_v8 = vld [vmem:[%s2699_s1 + $0x10] sm:$0xff] (!%p1976_p8)  }
  0x22   : > { %2086 = vmatpush3.bf16.msra.mxu0 (!%p1976_p8), %v2455_v4  ;;  %2389 = vmatpush3.bf16.msra.mxu1 (!%p1976_p8), %v2455_v4  ;;  %v2460_v9 = vld [vmem:[%s2699_s1 + $0x58] sm:$0xff] (!%p1976_p8)   ;;  %v2462_v11 = vld [vmem:[%s2699_s1 + $0x60] sm:$0xff] (!%p1976_p8)   ;;  %v2464_v13 = vld [vmem:[%s2699_s1 + $0x68] sm:$0xff] (!%p1976_p8)  }
  0x23   : > { %2087 = vmatprep.subr.bf16.mxu0 (!%p1976_p8), %v2456_v5  ;;  %2382 = vmatprep.subr.bf16.mxu1 (!%p1976_p8), %v2456_v5  ;;  %v2461_v10 = vld [vmem:[%s2699_s1 + $0x18] sm:$0xff] (!%p1976_p8)   ;;  %v2463_v12 = vld [vmem:[%s2699_s1 + $0x20] sm:$0xff] (!%p1976_p8)   ;;  %v2465_v14 = vld [vmem:[%s2699_s1 + $0x28] sm:$0xff] (!%p1976_p8)  }
  0x24   : > { %v2466_v15 = vld [vmem:[%s2699_s1 + $0x70] sm:$0xff]   ;;  %v2468_v17 = vld [vmem:[%s2699_s1 + $0x78] sm:$0xff]   ;;  %v2484_v26 = vld [vmem:[%s2687_s18 + $0xa4] ss:$8 sps:$4 sm:$0xff]  }
  0x25   : > { %v2467_v16 = vld [vmem:[%s2699_s1 + $0x30] sm:$0xff]   ;;  %v2469_v18 = vld [vmem:[%s2699_s1 + $0x38] sm:$0xff]   ;;  %v2486_v27 = vld [vmem:[%s2687_s18 + $0x20] ss:$8 sps:$4 sm:$0xff]  }
  0x26   : > { %2088 = vmatpush3.bf16.msra.mxu0 %v2457_v6  ;;  %2390 = vmatpush3.bf16.msra.mxu1 %v2457_v6  ;;  %v2478_v22 = vld [vmem:[%s2687_s18 + $0x94] ss:$8 sps:$4 sm:$0xff]   ;;  %v2481_v24 = vld [vmem:[%s2687_s18 + $0x90] ss:$8 sps:$4 sm:$0xff]   ;;  %v2487_v28 = vld [vmem:[%s2687_s18 + $0xa0] ss:$8 sps:$4 sm:$0xff]  }
  0x27   : > { %2089 = vmatprep.subr.bf16.mxu0 %v2458_v7  ;;  %2383 = vmatprep.subr.bf16.mxu1 %v2458_v7  ;;  %v2488_v29 = vld [vmem:[%s2687_s18 + $0x34] ss:$8 sps:$4 sm:$0xff]   ;;  %v2492_v31 = vld [vmem:[%s2687_s18 + $0x30] ss:$8 sps:$4 sm:$0xff]   ;;  %v2494_v33 = vld [vmem:[%s2687_s18 + $0x44] ss:$8 sps:$4 sm:$0xff]  }
  0x28   : > { %v2490_v30 = vld [vmem:[%s2687_s18 + $0xb4] ss:$8 sps:$4 sm:$0xff]   ;;  %v2493_v32 = vld [vmem:[%s2687_s18 + $0xb0] ss:$8 sps:$4 sm:$0xff]   ;;  %v2496_v34 = vld [vmem:[%s2687_s18 + $0xc4] ss:$8 sps:$4 sm:$0xff]  }
  0x29   : > { %v2498_v35 = vld [vmem:[%s2687_s18 + $0x40] ss:$8 sps:$4 sm:$0xff]   ;;  %v2500_v37 = vld [vmem:[%s2687_s18 + $0x54] ss:$8 sps:$4 sm:$0xff]   ;;  %v2504_v39 = vld [vmem:[%s2687_s18 + $0x50] ss:$8 sps:$4 sm:$0xff]  }
  0x2a   : > { %2090 = vmatpush3.bf16.msra.mxu0 %v2459_v8  ;;  %2391 = vmatpush3.bf16.msra.mxu1 %v2459_v8  ;;  %v2499_v36 = vld [vmem:[%s2687_s18 + $0xc0] ss:$8 sps:$4 sm:$0xff]   ;;  %v2502_v38 = vld [vmem:[%s2687_s18 + $0xd4] ss:$8 sps:$4 sm:$0xff]   ;;  %v2505_v40 = vld [vmem:[%s2687_s18 + $0xd0] ss:$8 sps:$4 sm:$0xff]  }
  0x2b   : > { %2091 = vmatprep.subr.bf16.mxu0 %v2460_v9  ;;  %2384 = vmatprep.subr.bf16.mxu1 %v2460_v9  ;;  %v2506_v41 = vld [vmem:[%s2687_s18 + $0x64] ss:$8 sps:$4 sm:$0xff]   ;;  %v2510_v43 = vld [vmem:[%s2687_s18 + $0x60] ss:$8 sps:$4 sm:$0xff]   ;;  %v2512_v45 = vld [vmem:[%s2687_s18 + $0x74] ss:$8 sps:$4 sm:$0xff]  }
  0x2c   : > { %v2508_v42 = vld [vmem:[%s2687_s18 + $0xe4] ss:$8 sps:$4 sm:$0xff]   ;;  %v2511_v44 = vld [vmem:[%s2687_s18 + $0xe0] ss:$8 sps:$4 sm:$0xff]   ;;  %v2514_v46 = vld [vmem:[%s2687_s18 + $0xf4] ss:$8 sps:$4 sm:$0xff]  }
  0x2d   : > { %v2516_v47 = vld [vmem:[%s2687_s18 + $0x70] ss:$8 sps:$4 sm:$0xff]   ;;  %v354_v51 = vld [vmem:[#allocation2] sm:$0xff]  ;;  %v355_v59 = vld [vmem:[#allocation2 + $0x8] sm:$0xff] }
  0x2e   : > { %2092 = vmatpush3.bf16.msra.mxu0 %v2461_v10  ;;  %2392 = vmatpush3.bf16.msra.mxu1 %v2461_v10  ;;  %v2517_v48 = vld [vmem:[%s2687_s18 + $0xf0] ss:$8 sps:$4 sm:$0xff]   ;;  %v370_v53 = vld [vmem:[#allocation2 + $0x80] sm:$0xff]  ;;  %v371_v61 = vld [vmem:[#allocation2 + $0x88] sm:$0xff] }
  0x2f   : > { %2093 = vmatprep.subr.bf16.mxu0 %v2462_v11  ;;  %2385 = vmatprep.subr.bf16.mxu1 %v2462_v11  ;;  %v356_v7 = vld [vmem:[#allocation2 + $0x10] sm:$0xff] }
  0x30   : > { %v372_v9 = vld [vmem:[#allocation2 + $0x90] sm:$0xff] }
  0x32   : > { %2094 = vmatpush3.bf16.msra.mxu0 %v2463_v12  ;;  %2393 = vmatpush3.bf16.msra.mxu1 %v2463_v12 }
  0x33   : > { %2095 = vmatprep.subr.bf16.mxu0 %v2464_v13  ;;  %2386 = vmatprep.subr.bf16.mxu1 %v2464_v13 }
  0x36   : > { %2096 = vmatpush3.bf16.msra.mxu0 %v2465_v14  ;;  %2394 = vmatpush3.bf16.msra.mxu1 %v2465_v14 }
  0x37   : > { %2097 = vmatprep.subr.bf16.mxu0 %v2466_v15  ;;  %2387 = vmatprep.subr.bf16.mxu1 %v2466_v15  ;;  %v357_v15 = vld [vmem:[#allocation2 + $0x18] sm:$0xff] }
  0x3a   : > { %2098 = vmatpush3.bf16.msra.mxu0 %v2467_v16  ;;  %2395 = vmatpush3.bf16.msra.mxu1 %v2467_v16 }
  0x3b   : > { %2099 = vmatprep.subr.bf16.mxu0 %v2468_v17  ;;  %2388 = vmatprep.subr.bf16.mxu1 %v2468_v17  ;;  %v373_v17 = vld [vmem:[#allocation2 + $0x98] sm:$0xff] }
  0x3e   : > { %2100 = vmatpush3.bf16.msra.mxu0 %v2469_v18  ;;  %2396 = vmatpush3.bf16.msra.mxu1 %v2469_v18 }
  0x41   : > { %743 = vmatmul.mubr.bf16.vlgmr.msra.gmra.mrb[0].mxu0 %v2470_v19  ;;  %807 = vmatmul.mubr.bf16.vlgmr.msra.gmra.mrb[0].mxu1 %v2473_v20 }
  0x42   : > { %750 = vmatprep.mubr.bf16.mxu0 %v2476_v21  ;;  %814 = vmatprep.mubr.bf16.mxu1 %v2478_v22 }
  0x49   : > { %751 = vmatmul.mubr.bf16.gmra.mrb[4].mxu0 %v2480_v23  ;;  %815 = vmatmul.mubr.bf16.gmra.mrb[4].mxu1 %v2481_v24 }
  0x4a   : > { %758 = vmatprep.mubr.bf16.mxu0 %v2482_v25  ;;  %822 = vmatprep.mubr.bf16.mxu1 %v2484_v26 }
  0x51   : > { %759 = vmatmul.mubr.bf16.gmra.mrb[8].mxu0 %v2486_v27  ;;  %823 = vmatmul.mubr.bf16.gmra.mrb[8].mxu1 %v2487_v28  ;;  %v358_v27 = vld [vmem:[#allocation2 + $0x20] sm:$0xff] }
  0x52   : > { %766 = vmatprep.mubr.bf16.mxu0 %v2488_v29  ;;  %830 = vmatprep.mubr.bf16.mxu1 %v2490_v30  ;;  %v374_v29 = vld [vmem:[#allocation2 + $0xa0] sm:$0xff] }
  0x59   : > { %767 = vmatmul.mubr.bf16.gmra.mrb[12].mxu0 %v2492_v31  ;;  %831 = vmatmul.mubr.bf16.gmra.mrb[12].mxu1 %v2493_v32 }
  0x5a   : > { %774 = vmatprep.mubr.bf16.mxu0 %v2494_v33  ;;  %838 = vmatprep.mubr.bf16.mxu1 %v2496_v34 }
  0x61   : > { %775 = vmatmul.mubr.bf16.gmra.mrb[16].mxu0 %v2498_v35  ;;  %839 = vmatmul.mubr.bf16.gmra.mrb[16].mxu1 %v2499_v36  ;;  %v359_v35 = vld [vmem:[#allocation2 + $0x28] sm:$0xff] }
  0x62   : > { %782 = vmatprep.mubr.bf16.mxu0 %v2500_v37  ;;  %846 = vmatprep.mubr.bf16.mxu1 %v2502_v38  ;;  %v375_v37 = vld [vmem:[#allocation2 + $0xa8] sm:$0xff] }
  0x69   : > { %783 = vmatmul.mubr.bf16.gmra.mrb[20].mxu0 %v2504_v39  ;;  %847 = vmatmul.mubr.bf16.gmra.mrb[20].mxu1 %v2505_v40 }
  0x6a   : > { %790 = vmatprep.mubr.bf16.mxu0 %v2506_v41  ;;  %854 = vmatprep.mubr.bf16.mxu1 %v2508_v42 }
  0x71   : > { %791 = vmatmul.mubr.bf16.gmra.mrb[24].mxu0 %v2510_v43  ;;  %855 = vmatmul.mubr.bf16.gmra.mrb[24].mxu1 %v2511_v44 }
  0x72   : > { %798 = vmatprep.mubr.bf16.mxu0 %v2512_v45  ;;  %862 = vmatprep.mubr.bf16.mxu1 %v2514_v46 }
  0x79   : > { %799 = vmatmul.mubr.bf16.gmra.mrb[28].mxu0 %v2516_v47  ;;  %863 = vmatmul.mubr.bf16.gmra.mrb[28].mxu1 %v2517_v48  ;;  %v360_v47 = vld [vmem:[#allocation2 + $0x30] sm:$0xff] }
 0x114   : > { %v2101_v49 = vpop.f32.mrb[0].mxu0  ;;  %v2149_v50 = vpop.f32.mrb[0].mxu1 }
 0x115   : > { %v2102_v52 = vpop.f32.mrb[1].mxu0  ;;  %v2150_v54 = vpop.f32.mrb[1].mxu1 }
 0x116   : > { %v2103_v55 = vadd.f32 %v2102_v52, %v2101_v49  ;;  %v2151_v56 = vadd.f32 %v2150_v54, %v2149_v50  ;;  %v2104_v57 = vpop.f32.mrb[2].mxu0  ;;  %v2152_v58 = vpop.f32.mrb[2].mxu1  ;;  %v376_v49 = vld [vmem:[#allocation2 + $0xb0] sm:$0xff] }
 0x117   : > { %v2105_v60 = vpop.f32.mrb[3].mxu0  ;;  %v2153_v62 = vpop.f32.mrb[3].mxu1 }
 0x118   : > { %v871_v63 = vadd.f32 %v2103_v55, %v354_v51  ;;  %v887_v0 = vadd.f32 %v2151_v56, %v370_v53  ;;  %v2106_v1 = vadd.f32 %v2105_v60, %v2104_v57  ;;  %v2154_v2 = vadd.f32 %v2153_v62, %v2152_v58  ;;  %v361_v55 = vld [vmem:[#allocation2 + $0x38] sm:$0xff] }
 0x119   : > { %v377_v57 = vld [vmem:[#allocation2 + $0xb8] sm:$0xff] }
 0x11a   : > { %903 = vst [vmem:[#allocation2] sm:$0xff] %v871_v63  ;;  %919 = vst [vmem:[#allocation2 + $0x80] sm:$0xff] %v887_v0  ;;  %v872_v3 = vadd.f32 %v2106_v1, %v355_v59  ;;  %v888_v4 = vadd.f32 %v2154_v2, %v371_v61 }
 0x11c   : > { %904 = vst [vmem:[#allocation2 + $0x8] sm:$0xff] %v872_v3  ;;  %920 = vst [vmem:[#allocation2 + $0x88] sm:$0xff] %v888_v4  ;;  %v2107_v5 = vpop.f32.mrb[4].mxu0  ;;  %v2155_v6 = vpop.f32.mrb[4].mxu1  ;;  %v362_v3 = vld [vmem:[#allocation2 + $0x40] sm:$0xff] }
 0x11d   : > { %v2108_v8 = vpop.f32.mrb[5].mxu0  ;;  %v2156_v10 = vpop.f32.mrb[5].mxu1 }
 0x11e   : > { %v2109_v11 = vadd.f32 %v2108_v8, %v2107_v5  ;;  %v2157_v12 = vadd.f32 %v2156_v10, %v2155_v6  ;;  %v2110_v13 = vpop.f32.mrb[6].mxu0  ;;  %v2158_v14 = vpop.f32.mrb[6].mxu1  ;;  %v378_v5 = vld [vmem:[#allocation2 + $0xc0] sm:$0xff] }
 0x11f   : > { %v2111_v16 = vpop.f32.mrb[7].mxu0  ;;  %v2159_v18 = vpop.f32.mrb[7].mxu1 }
 0x120   : > { %v873_v19 = vadd.f32 %v2109_v11, %v356_v7  ;;  %v889_v20 = vadd.f32 %v2157_v12, %v372_v9  ;;  %v2112_v21 = vadd.f32 %v2111_v16, %v2110_v13  ;;  %v2160_v22 = vadd.f32 %v2159_v18, %v2158_v14  ;;  %v363_v11 = vld [vmem:[#allocation2 + $0x48] sm:$0xff] }
 0x121   : > { %v379_v13 = vld [vmem:[#allocation2 + $0xc8] sm:$0xff] }
 0x122   : > { %905 = vst [vmem:[#allocation2 + $0x10] sm:$0xff] %v873_v19  ;;  %921 = vst [vmem:[#allocation2 + $0x90] sm:$0xff] %v889_v20  ;;  %v874_v23 = vadd.f32 %v2112_v21, %v357_v15  ;;  %v890_v24 = vadd.f32 %v2160_v22, %v373_v17 }
 0x124   : > { %906 = vst [vmem:[#allocation2 + $0x18] sm:$0xff] %v874_v23  ;;  %922 = vst [vmem:[#allocation2 + $0x98] sm:$0xff] %v890_v24  ;;  %v2113_v25 = vpop.f32.mrb[8].mxu0  ;;  %v2161_v26 = vpop.f32.mrb[8].mxu1  ;;  %v364_v23 = vld [vmem:[#allocation2 + $0x50] sm:$0xff] }
 0x125   : > { %v2114_v28 = vpop.f32.mrb[9].mxu0  ;;  %v2162_v30 = vpop.f32.mrb[9].mxu1 }
 0x126   : > { %v2115_v31 = vadd.f32 %v2114_v28, %v2113_v25  ;;  %v2163_v32 = vadd.f32 %v2162_v30, %v2161_v26  ;;  %v2116_v33 = vpop.f32.mrb[10].mxu0  ;;  %v2164_v34 = vpop.f32.mrb[10].mxu1  ;;  %v380_v25 = vld [vmem:[#allocation2 + $0xd0] sm:$0xff] }
 0x127   : > { %v2117_v36 = vpop.f32.mrb[11].mxu0  ;;  %v2165_v38 = vpop.f32.mrb[11].mxu1 }
 0x128   : > { %v875_v39 = vadd.f32 %v2115_v31, %v358_v27  ;;  %v891_v40 = vadd.f32 %v2163_v32, %v374_v29  ;;  %v2118_v41 = vadd.f32 %v2117_v36, %v2116_v33  ;;  %v2166_v42 = vadd.f32 %v2165_v38, %v2164_v34  ;;  %v365_v31 = vld [vmem:[#allocation2 + $0x58] sm:$0xff] }
 0x129   : > { %v381_v33 = vld [vmem:[#allocation2 + $0xd8] sm:$0xff] }
 0x12a   : > { %907 = vst [vmem:[#allocation2 + $0x20] sm:$0xff] %v875_v39  ;;  %923 = vst [vmem:[#allocation2 + $0xa0] sm:$0xff] %v891_v40  ;;  %v876_v43 = vadd.f32 %v2118_v41, %v359_v35  ;;  %v892_v44 = vadd.f32 %v2166_v42, %v375_v37 }
 0x12c   : > { %908 = vst [vmem:[#allocation2 + $0x28] sm:$0xff] %v876_v43  ;;  %924 = vst [vmem:[#allocation2 + $0xa8] sm:$0xff] %v892_v44  ;;  %v2119_v45 = vpop.f32.mrb[12].mxu0  ;;  %v2167_v46 = vpop.f32.mrb[12].mxu1  ;;  %v366_v43 = vld [vmem:[#allocation2 + $0x60] sm:$0xff] }
 0x12d   : > { %v2120_v48 = vpop.f32.mrb[13].mxu0  ;;  %v2168_v50 = vpop.f32.mrb[13].mxu1 }
 0x12e   : > { %v2121_v51 = vadd.f32 %v2120_v48, %v2119_v45  ;;  %v2169_v52 = vadd.f32 %v2168_v50, %v2167_v46  ;;  %v2122_v53 = vpop.f32.mrb[14].mxu0  ;;  %v2170_v54 = vpop.f32.mrb[14].mxu1  ;;  %v382_v45 = vld [vmem:[#allocation2 + $0xe0] sm:$0xff] }
 0x12f   : > { %v2123_v56 = vpop.f32.mrb[15].mxu0  ;;  %v2171_v58 = vpop.f32.mrb[15].mxu1 }
 0x130   : > { %v877_v59 = vadd.f32 %v2121_v51, %v360_v47  ;;  %v893_v60 = vadd.f32 %v2169_v52, %v376_v49  ;;  %v2124_v61 = vadd.f32 %v2123_v56, %v2122_v53  ;;  %v2172_v62 = vadd.f32 %v2171_v58, %v2170_v54  ;;  %v367_v51 = vld [vmem:[#allocation2 + $0x68] sm:$0xff] }
 0x131   : > { %v383_v53 = vld [vmem:[#allocation2 + $0xe8] sm:$0xff] }
 0x132   : > { %909 = vst [vmem:[#allocation2 + $0x30] sm:$0xff] %v877_v59  ;;  %925 = vst [vmem:[#allocation2 + $0xb0] sm:$0xff] %v893_v60  ;;  %v878_v63 = vadd.f32 %v2124_v61, %v361_v55  ;;  %v894_v0 = vadd.f32 %v2172_v62, %v377_v57 }
 0x134   : > { %910 = vst [vmem:[#allocation2 + $0x38] sm:$0xff] %v878_v63  ;;  %926 = vst [vmem:[#allocation2 + $0xb8] sm:$0xff] %v894_v0  ;;  %v2125_v1 = vpop.f32.mrb[16].mxu0  ;;  %v2173_v2 = vpop.f32.mrb[16].mxu1  ;;  %v368_v63 = vld [vmem:[#allocation2 + $0x70] sm:$0xff] }
 0x135   : > { %v2126_v4 = vpop.f32.mrb[17].mxu0  ;;  %v2174_v6 = vpop.f32.mrb[17].mxu1 }
 0x136   : > { %v2127_v7 = vadd.f32 %v2126_v4, %v2125_v1  ;;  %v2175_v8 = vadd.f32 %v2174_v6, %v2173_v2  ;;  %v2128_v9 = vpop.f32.mrb[18].mxu0  ;;  %v2176_v10 = vpop.f32.mrb[18].mxu1  ;;  %v384_v1 = vld [vmem:[#allocation2 + $0xf0] sm:$0xff] }
 0x137   : > { %v2129_v12 = vpop.f32.mrb[19].mxu0  ;;  %v2177_v14 = vpop.f32.mrb[19].mxu1 }
 0x138   : > { %v879_v15 = vadd.f32 %v2127_v7, %v362_v3  ;;  %v895_v16 = vadd.f32 %v2175_v8, %v378_v5  ;;  %v2130_v17 = vadd.f32 %v2129_v12, %v2128_v9  ;;  %v2178_v18 = vadd.f32 %v2177_v14, %v2176_v10  ;;  %v369_v7 = vld [vmem:[#allocation2 + $0x78] sm:$0xff] }
 0x139   : > { %v385_v9 = vld [vmem:[#allocation2 + $0xf8] sm:$0xff] }
 0x13a   : > { %911 = vst [vmem:[#allocation2 + $0x40] sm:$0xff] %v879_v15  ;;  %927 = vst [vmem:[#allocation2 + $0xc0] sm:$0xff] %v895_v16  ;;  %v880_v19 = vadd.f32 %v2130_v17, %v363_v11  ;;  %v896_v20 = vadd.f32 %v2178_v18, %v379_v13 }
 0x13c   : > { %912 = vst [vmem:[#allocation2 + $0x48] sm:$0xff] %v880_v19  ;;  %928 = vst [vmem:[#allocation2 + $0xc8] sm:$0xff] %v896_v20  ;;  %v2131_v21 = vpop.f32.mrb[20].mxu0  ;;  %v2179_v22 = vpop.f32.mrb[20].mxu1 }
 0x13d   : > { %v2132_v24 = vpop.f32.mrb[21].mxu0  ;;  %v2180_v26 = vpop.f32.mrb[21].mxu1 }
 0x13e   : > { %v2133_v27 = vadd.f32 %v2132_v24, %v2131_v21  ;;  %v2181_v28 = vadd.f32 %v2180_v26, %v2179_v22  ;;  %v2134_v29 = vpop.f32.mrb[22].mxu0  ;;  %v2182_v30 = vpop.f32.mrb[22].mxu1 }
 0x13f   : > { %v2135_v32 = vpop.f32.mrb[23].mxu0  ;;  %v2183_v34 = vpop.f32.mrb[23].mxu1 }
 0x140   : > { %v881_v35 = vadd.f32 %v2133_v27, %v364_v23  ;;  %v897_v36 = vadd.f32 %v2181_v28, %v380_v25  ;;  %v2136_v37 = vadd.f32 %v2135_v32, %v2134_v29  ;;  %v2184_v38 = vadd.f32 %v2183_v34, %v2182_v30 }
 0x142   : > { %913 = vst [vmem:[#allocation2 + $0x50] sm:$0xff] %v881_v35  ;;  %929 = vst [vmem:[#allocation2 + $0xd0] sm:$0xff] %v897_v36  ;;  %v882_v39 = vadd.f32 %v2136_v37, %v365_v31  ;;  %v898_v40 = vadd.f32 %v2184_v38, %v381_v33 }
 0x144   : > { %914 = vst [vmem:[#allocation2 + $0x58] sm:$0xff] %v882_v39  ;;  %930 = vst [vmem:[#allocation2 + $0xd8] sm:$0xff] %v898_v40  ;;  %v2137_v41 = vpop.f32.mrb[24].mxu0  ;;  %v2185_v42 = vpop.f32.mrb[24].mxu1 }
 0x145   : > { %v2138_v44 = vpop.f32.mrb[25].mxu0  ;;  %v2186_v46 = vpop.f32.mrb[25].mxu1 }
 0x146   : > { %v2139_v47 = vadd.f32 %v2138_v44, %v2137_v41  ;;  %v2187_v48 = vadd.f32 %v2186_v46, %v2185_v42  ;;  %v2140_v49 = vpop.f32.mrb[26].mxu0  ;;  %v2188_v50 = vpop.f32.mrb[26].mxu1 }
 0x147   : > { %v2141_v52 = vpop.f32.mrb[27].mxu0  ;;  %v2189_v54 = vpop.f32.mrb[27].mxu1 }
 0x148   : > { %v883_v55 = vadd.f32 %v2139_v47, %v366_v43  ;;  %v899_v56 = vadd.f32 %v2187_v48, %v382_v45  ;;  %v2142_v57 = vadd.f32 %v2141_v52, %v2140_v49  ;;  %v2190_v58 = vadd.f32 %v2189_v54, %v2188_v50 }
 0x14a   : > { %915 = vst [vmem:[#allocation2 + $0x60] sm:$0xff] %v883_v55  ;;  %931 = vst [vmem:[#allocation2 + $0xe0] sm:$0xff] %v899_v56  ;;  %v884_v59 = vadd.f32 %v2142_v57, %v367_v51  ;;  %v900_v60 = vadd.f32 %v2190_v58, %v383_v53 }
 0x14c   : > { %916 = vst [vmem:[#allocation2 + $0x68] sm:$0xff] %v884_v59  ;;  %932 = vst [vmem:[#allocation2 + $0xe8] sm:$0xff] %v900_v60  ;;  %v2143_v61 = vpop.f32.mrb[28].mxu0  ;;  %v2191_v62 = vpop.f32.mrb[28].mxu1 }
 0x14d   : > { %v2144_v0 = vpop.f32.mrb[29].mxu0  ;;  %v2192_v2 = vpop.f32.mrb[29].mxu1 }
 0x14e   : > { %v2145_v3 = vadd.f32 %v2144_v0, %v2143_v61  ;;  %v2193_v4 = vadd.f32 %v2192_v2, %v2191_v62  ;;  %v2146_v5 = vpop.f32.mrb[30].mxu0  ;;  %v2194_v6 = vpop.f32.mrb[30].mxu1 }
 0x14f   : > { %v2147_v8 = vpop.f32.mrb[31].mxu0  ;;  %v2195_v10 = vpop.f32.mrb[31].mxu1 }
 0x150   : > { %v885_v11 = vadd.f32 %v2145_v3, %v368_v63  ;;  %v901_v12 = vadd.f32 %v2193_v4, %v384_v1  ;;  %v2148_v13 = vadd.f32 %v2147_v8, %v2146_v5  ;;  %v2196_v14 = vadd.f32 %v2195_v10, %v2194_v6 }
 0x152   : > { %917 = vst [vmem:[#allocation2 + $0x70] sm:$0xff] %v885_v11  ;;  %933 = vst [vmem:[#allocation2 + $0xf0] sm:$0xff] %v901_v12  ;;  %v886_v15 = vadd.f32 %v2148_v13, %v369_v7  ;;  %v902_v16 = vadd.f32 %v2196_v14, %v385_v9 }
 0x154   : > { %918 = vst [vmem:[#allocation2 + $0x78] sm:$0xff] %v886_v15  ;;  %934 = vst [vmem:[#allocation2 + $0xf8] sm:$0xff] %v902_v16 }
 0x155 PF: > { %p2026_p9 = scmp.le.s32.totalorder %s2588_s25, 0 }
 0x156   : > { %p939_p10 = scmp.lt.s32.totalorder (!%p2026_p9), %s2588_s25, 0  ;;  %s940_s28 = ssub.s32 (!%p2026_p9), 0, %s2588_s25  ;;  %v2520_v17 = vld [vmem:[%s2687_s18 + $0x4] ss:$8 sps:$4 sm:$0xff] (!%p2026_p9)   ;;  %v2518_v35 = vld [vmem:[%s2687_s18] ss:$8 sps:$4 sm:$0xff] (!%p2026_p9)  }
 0x157   : > { %938 = sbr.rel (%p2026_p9) target bundleno = 668 (0x29c), region = 52  ;;  %s2027_s29 = smin.u32 (!%p2026_p9), %s2588_s25, %s940_s28  ;;  %v2523_v18 = vld [vmem:[%s2687_s18 + $0x84] ss:$8 sps:$4 sm:$0xff] (!%p2026_p9)   ;;  %1229 = vmatprep.mubr.bf16.mxu0 (!%p2026_p9), %v2520_v17  ;;  %v2521_v36 = vld [vmem:[%s2687_s18 + $0x80] ss:$8 sps:$4 sm:$0xff] (!%p2026_p9)  }
 0x158   : > { %s942_s7 = sand.u32 (!%p2026_p9), 1, %s2027_s29   ;;  %1293 = vmatprep.mubr.bf16.mxu1 (!%p2026_p9), %v2523_v18  ;;  %v2524_v37 = vld [vmem:[%s2687_s18 + $0x14] ss:$8 sps:$4 sm:$0xff] (!%p2026_p9)   ;;  %v2528_v39 = vld [vmem:[%s2687_s18 + $0x10] ss:$8 sps:$4 sm:$0xff] (!%p2026_p9)   ;;  %v953_v3 = vld [vmem:[#allocation2] sm:$0xff] (!%p2026_p9) }
 0x159   : > { %s943_s8 = ssub.s32 (!%p2026_p9), 0, %s942_s7  ;;  %v2526_v38 = vld [vmem:[%s2687_s18 + $0x94] ss:$8 sps:$4 sm:$0xff] (!%p2026_p9)   ;;  %v2529_v40 = vld [vmem:[%s2687_s18 + $0x90] ss:$8 sps:$4 sm:$0xff] (!%p2026_p9)   ;;  %v969_v5 = vld [vmem:[#allocation2 + $0x80] sm:$0xff] (!%p2026_p9) }
 0x15a   : > { %v2530_v41 = vld [vmem:[%s2687_s18 + $0x24] ss:$8 sps:$4 sm:$0xff] (!%p2026_p9)   ;;  %v2534_v43 = vld [vmem:[%s2687_s18 + $0x20] ss:$8 sps:$4 sm:$0xff] (!%p2026_p9)   ;;  %v2536_v45 = vld [vmem:[%s2687_s18 + $0x34] ss:$8 sps:$4 sm:$0xff] (!%p2026_p9)  }
 0x15b   : > { %v2532_v42 = vld [vmem:[%s2687_s18 + $0xa4] ss:$8 sps:$4 sm:$0xff] (!%p2026_p9)   ;;  %v2535_v44 = vld [vmem:[%s2687_s18 + $0xa0] ss:$8 sps:$4 sm:$0xff] (!%p2026_p9)   ;;  %v2538_v46 = vld [vmem:[%s2687_s18 + $0xb4] ss:$8 sps:$4 sm:$0xff] (!%p2026_p9)  }
 0x15c   : > { %v2540_v47 = vld [vmem:[%s2687_s18 + $0x30] ss:$8 sps:$4 sm:$0xff] (!%p2026_p9)   ;;  %v2542_v49 = vld [vmem:[%s2687_s18 + $0x44] ss:$8 sps:$4 sm:$0xff] (!%p2026_p9)   ;;  %v2546_v51 = vld [vmem:[%s2687_s18 + $0x40] ss:$8 sps:$4 sm:$0xff] (!%p2026_p9)  }
 0x15d   : > { %v2541_v48 = vld [vmem:[%s2687_s18 + $0xb0] ss:$8 sps:$4 sm:$0xff] (!%p2026_p9)   ;;  %v2544_v50 = vld [vmem:[%s2687_s18 + $0xc4] ss:$8 sps:$4 sm:$0xff] (!%p2026_p9)   ;;  %v2547_v52 = vld [vmem:[%s2687_s18 + $0xc0] ss:$8 sps:$4 sm:$0xff] (!%p2026_p9)  }
 0x15e   : > { %s3087_s8 = smov (!%p939_p10, %s943_s8), %s942_s7  ;;  %v2548_v53 = vld [vmem:[%s2687_s18 + $0x54] ss:$8 sps:$4 sm:$0xff]   ;;  %v2552_v55 = vld [vmem:[%s2687_s18 + $0x50] ss:$8 sps:$4 sm:$0xff]   ;;  %v2554_v57 = vld [vmem:[%s2687_s18 + $0x64] ss:$8 sps:$4 sm:$0xff]  }
 0x15f   : > { %p2029_p11 = scmp.lt.s32.totalorder %s3087_s8, 0  ;;  %s949_s10 = sadd.s32 2, %s3087_s8  ;;  %v2550_v54 = vld [vmem:[%s2687_s18 + $0xd4] ss:$8 sps:$4 sm:$0xff]   ;;  %v2553_v56 = vld [vmem:[%s2687_s18 + $0xd0] ss:$8 sps:$4 sm:$0xff]  }
 0x160   : > { %v2556_v58 = vld [vmem:[%s2687_s18 + $0xe4] ss:$8 sps:$4 sm:$0xff]   ;;  %v2558_v59 = vld [vmem:[%s2687_s18 + $0x60] ss:$8 sps:$4 sm:$0xff]   ;;  %v2560_v61 = vld [vmem:[%s2687_s18 + $0x74] ss:$8 sps:$4 sm:$0xff]  }
 0x161   : > { %s3089_s10 = smov (!%p2029_p11, %s949_s10), %s3087_s8  ;;  %v2559_v60 = vld [vmem:[%s2687_s18 + $0xe0] ss:$8 sps:$4 sm:$0xff]   ;;  %v2562_v62 = vld [vmem:[%s2687_s18 + $0xf4] ss:$8 sps:$4 sm:$0xff]   ;;  %v2564_v63 = vld [vmem:[%s2687_s18 + $0x70] ss:$8 sps:$4 sm:$0xff]  }
 0x162   : > { %s2030_s11 = sshll.u32 %s3089_s10, 8  ;;  %v2565_v0 = vld [vmem:[%s2687_s18 + $0xf0] ss:$8 sps:$4 sm:$0xff]   ;;  %v954_v11 = vld [vmem:[#allocation2 + $0x8] sm:$0xff] }
 0x163   : > { %s952_s12 = sadd.s32 %s2030_s11, %s1975_s20  ;;  %v970_v13 = vld [vmem:[#allocation2 + $0x88] sm:$0xff] }
 0x164   : > { %s1017_s13 = sshra.s32 %s952_s12, 4 }
 0x165   : > { %s2031_s15 = sshll.u32 %s1017_s13, 3 }
 0x166   : > { %s2756_s16 = scalar_lea.vmem [#allocation3], %s2031_s15 }
 0x167   : > { %v1029_v19 = vld [vmem:[%s2756_s16 + $0x40] sm:$0xff]  ;;  %v1030_v21 = vld [vmem:[%s2756_s16 + $0x48] sm:$0xff]  ;;  %v1031_v23 = vld [vmem:[%s2756_s16 + $0x50] sm:$0xff] }
 0x168   : > { %v1021_v20 = vld [vmem:[%s2756_s16] sm:$0xff]  ;;  %2197 = vmatprep.subr.bf16.mxu0 %v1029_v19  ;;  %2397 = vmatprep.subr.bf16.mxu1 %v1029_v19  ;;  %v1022_v22 = vld [vmem:[%s2756_s16 + $0x8] sm:$0xff]  ;;  %v1023_v24 = vld [vmem:[%s2756_s16 + $0x10] sm:$0xff] }
 0x169   : > { %2198 = vmatpush3.bf16.msra.mxu0 %v1021_v20  ;;  %2405 = vmatpush3.bf16.msra.mxu1 %v1021_v20  ;;  %v1032_v25 = vld [vmem:[%s2756_s16 + $0x58] sm:$0xff]  ;;  %v1033_v27 = vld [vmem:[%s2756_s16 + $0x60] sm:$0xff]  ;;  %v1034_v29 = vld [vmem:[%s2756_s16 + $0x68] sm:$0xff] }
 0x16a   : > { %2199 = vmatprep.subr.bf16.mxu0 %v1030_v21  ;;  %2398 = vmatprep.subr.bf16.mxu1 %v1030_v21  ;;  %v1024_v26 = vld [vmem:[%s2756_s16 + $0x18] sm:$0xff]  ;;  %v1025_v28 = vld [vmem:[%s2756_s16 + $0x20] sm:$0xff]  ;;  %v1026_v30 = vld [vmem:[%s2756_s16 + $0x28] sm:$0xff] }
 0x16b   : > { %v1035_v31 = vld [vmem:[%s2756_s16 + $0x70] sm:$0xff]  ;;  %v1036_v33 = vld [vmem:[%s2756_s16 + $0x78] sm:$0xff] }
 0x16c   : > { %v1027_v32 = vld [vmem:[%s2756_s16 + $0x30] sm:$0xff]  ;;  %v1028_v34 = vld [vmem:[%s2756_s16 + $0x38] sm:$0xff] }
 0x16d   : > { %2200 = vmatpush3.bf16.msra.mxu0 %v1022_v22  ;;  %2406 = vmatpush3.bf16.msra.mxu1 %v1022_v22 }
 0x16e   : > { %2201 = vmatprep.subr.bf16.mxu0 %v1031_v23  ;;  %2399 = vmatprep.subr.bf16.mxu1 %v1031_v23  ;;  %v955_v23 = vld [vmem:[#allocation2 + $0x10] sm:$0xff] }
 0x171   : > { %2202 = vmatpush3.bf16.msra.mxu0 %v1023_v24  ;;  %2407 = vmatpush3.bf16.msra.mxu1 %v1023_v24 }
 0x172   : > { %2203 = vmatprep.subr.bf16.mxu0 %v1032_v25  ;;  %2400 = vmatprep.subr.bf16.mxu1 %v1032_v25  ;;  %v971_v25 = vld [vmem:[#allocation2 + $0x90] sm:$0xff] }
 0x175   : > { %2204 = vmatpush3.bf16.msra.mxu0 %v1024_v26  ;;  %2408 = vmatpush3.bf16.msra.mxu1 %v1024_v26 }
 0x176   : > { %2205 = vmatprep.subr.bf16.mxu0 %v1033_v27  ;;  %2401 = vmatprep.subr.bf16.mxu1 %v1033_v27 }
 0x179   : > { %2206 = vmatpush3.bf16.msra.mxu0 %v1025_v28  ;;  %2409 = vmatpush3.bf16.msra.mxu1 %v1025_v28 }
 0x17a   : > { %2207 = vmatprep.subr.bf16.mxu0 %v1034_v29  ;;  %2402 = vmatprep.subr.bf16.mxu1 %v1034_v29 }
 0x17d   : > { %2208 = vmatpush3.bf16.msra.mxu0 %v1026_v30  ;;  %2410 = vmatpush3.bf16.msra.mxu1 %v1026_v30 }
 0x17e   : > { %2209 = vmatprep.subr.bf16.mxu0 %v1035_v31  ;;  %2403 = vmatprep.subr.bf16.mxu1 %v1035_v31  ;;  %v956_v31 = vld [vmem:[#allocation2 + $0x18] sm:$0xff] }
 0x181   : > { %2210 = vmatpush3.bf16.msra.mxu0 %v1027_v32  ;;  %2411 = vmatpush3.bf16.msra.mxu1 %v1027_v32 }
 0x182   : > { %2211 = vmatprep.subr.bf16.mxu0 %v1036_v33  ;;  %2404 = vmatprep.subr.bf16.mxu1 %v1036_v33  ;;  %v972_v33 = vld [vmem:[#allocation2 + $0x98] sm:$0xff] }
 0x185   : > { %2212 = vmatpush3.bf16.msra.mxu0 %v1028_v34  ;;  %2412 = vmatpush3.bf16.msra.mxu1 %v1028_v34 }
 0x188   : > { %1230 = vmatmul.mubr.bf16.vlgmr.msra.gmra.mrb[0].mxu0 %v2518_v35  ;;  %1294 = vmatmul.mubr.bf16.vlgmr.msra.gmra.mrb[0].mxu1 %v2521_v36 }
 0x189   : > { %1237 = vmatprep.mubr.bf16.mxu0 %v2524_v37  ;;  %1301 = vmatprep.mubr.bf16.mxu1 %v2526_v38 }
 0x190   : > { %1238 = vmatmul.mubr.bf16.gmra.mrb[4].mxu0 %v2528_v39  ;;  %1302 = vmatmul.mubr.bf16.gmra.mrb[4].mxu1 %v2529_v40 }
 0x191   : > { %1245 = vmatprep.mubr.bf16.mxu0 %v2530_v41  ;;  %1309 = vmatprep.mubr.bf16.mxu1 %v2532_v42 }
 0x198   : > { %1246 = vmatmul.mubr.bf16.gmra.mrb[8].mxu0 %v2534_v43  ;;  %1310 = vmatmul.mubr.bf16.gmra.mrb[8].mxu1 %v2535_v44  ;;  %v957_v43 = vld [vmem:[#allocation2 + $0x20] sm:$0xff] }
 0x199   : > { %1253 = vmatprep.mubr.bf16.mxu0 %v2536_v45  ;;  %1317 = vmatprep.mubr.bf16.mxu1 %v2538_v46  ;;  %v973_v45 = vld [vmem:[#allocation2 + $0xa0] sm:$0xff] }
 0x1a0   : > { %1254 = vmatmul.mubr.bf16.gmra.mrb[12].mxu0 %v2540_v47  ;;  %1318 = vmatmul.mubr.bf16.gmra.mrb[12].mxu1 %v2541_v48 }
 0x1a1   : > { %1261 = vmatprep.mubr.bf16.mxu0 %v2542_v49  ;;  %1325 = vmatprep.mubr.bf16.mxu1 %v2544_v50 }
 0x1a8   : > { %1262 = vmatmul.mubr.bf16.gmra.mrb[16].mxu0 %v2546_v51  ;;  %1326 = vmatmul.mubr.bf16.gmra.mrb[16].mxu1 %v2547_v52  ;;  %v958_v51 = vld [vmem:[#allocation2 + $0x28] sm:$0xff] }
 0x1a9   : > { %1269 = vmatprep.mubr.bf16.mxu0 %v2548_v53  ;;  %1333 = vmatprep.mubr.bf16.mxu1 %v2550_v54  ;;  %v974_v53 = vld [vmem:[#allocation2 + $0xa8] sm:$0xff] }
 0x1b0   : > { %1270 = vmatmul.mubr.bf16.gmra.mrb[20].mxu0 %v2552_v55  ;;  %1334 = vmatmul.mubr.bf16.gmra.mrb[20].mxu1 %v2553_v56 }
 0x1b1   : > { %1277 = vmatprep.mubr.bf16.mxu0 %v2554_v57  ;;  %1341 = vmatprep.mubr.bf16.mxu1 %v2556_v58 }
 0x1b8   : > { %1278 = vmatmul.mubr.bf16.gmra.mrb[24].mxu0 %v2558_v59  ;;  %1342 = vmatmul.mubr.bf16.gmra.mrb[24].mxu1 %v2559_v60 }
 0x1b9   : > { %1285 = vmatprep.mubr.bf16.mxu0 %v2560_v61  ;;  %1349 = vmatprep.mubr.bf16.mxu1 %v2562_v62 }
 0x1c0   : > { %1286 = vmatmul.mubr.bf16.gmra.mrb[28].mxu0 %v2564_v63  ;;  %1350 = vmatmul.mubr.bf16.gmra.mrb[28].mxu1 %v2565_v0  ;;  %v959_v63 = vld [vmem:[#allocation2 + $0x30] sm:$0xff] }
 0x25b   : > { %v2213_v1 = vpop.f32.mrb[0].mxu0  ;;  %v2261_v2 = vpop.f32.mrb[0].mxu1 }
 0x25c   : > { %v2214_v4 = vpop.f32.mrb[1].mxu0  ;;  %v2262_v6 = vpop.f32.mrb[1].mxu1 }
 0x25d   : > { %v2215_v7 = vadd.f32 %v2214_v4, %v2213_v1  ;;  %v2263_v8 = vadd.f32 %v2262_v6, %v2261_v2  ;;  %v2216_v9 = vpop.f32.mrb[2].mxu0  ;;  %v2264_v10 = vpop.f32.mrb[2].mxu1  ;;  %v975_v1 = vld [vmem:[#allocation2 + $0xb0] sm:$0xff] }
 0x25e   : > { %v2217_v12 = vpop.f32.mrb[3].mxu0  ;;  %v2265_v14 = vpop.f32.mrb[3].mxu1 }
 0x25f   : > { %v1358_v15 = vadd.f32 %v2215_v7, %v953_v3  ;;  %v1374_v16 = vadd.f32 %v2263_v8, %v969_v5  ;;  %v2218_v17 = vadd.f32 %v2217_v12, %v2216_v9  ;;  %v2266_v18 = vadd.f32 %v2265_v14, %v2264_v10  ;;  %v960_v7 = vld [vmem:[#allocation2 + $0x38] sm:$0xff] }
 0x260   : > { %v976_v9 = vld [vmem:[#allocation2 + $0xb8] sm:$0xff] }
 0x261   : > { %1390 = vst [vmem:[#allocation2] sm:$0xff] %v1358_v15  ;;  %1406 = vst [vmem:[#allocation2 + $0x80] sm:$0xff] %v1374_v16  ;;  %v1359_v19 = vadd.f32 %v2218_v17, %v954_v11  ;;  %v1375_v20 = vadd.f32 %v2266_v18, %v970_v13 }
 0x263   : > { %1391 = vst [vmem:[#allocation2 + $0x8] sm:$0xff] %v1359_v19  ;;  %1407 = vst [vmem:[#allocation2 + $0x88] sm:$0xff] %v1375_v20  ;;  %v2219_v21 = vpop.f32.mrb[4].mxu0  ;;  %v2267_v22 = vpop.f32.mrb[4].mxu1  ;;  %v961_v19 = vld [vmem:[#allocation2 + $0x40] sm:$0xff] }
 0x264   : > { %v2220_v24 = vpop.f32.mrb[5].mxu0  ;;  %v2268_v26 = vpop.f32.mrb[5].mxu1 }
 0x265   : > { %v2221_v27 = vadd.f32 %v2220_v24, %v2219_v21  ;;  %v2269_v28 = vadd.f32 %v2268_v26, %v2267_v22  ;;  %v2222_v29 = vpop.f32.mrb[6].mxu0  ;;  %v2270_v30 = vpop.f32.mrb[6].mxu1  ;;  %v977_v21 = vld [vmem:[#allocation2 + $0xc0] sm:$0xff] }
 0x266   : > { %v2223_v32 = vpop.f32.mrb[7].mxu0  ;;  %v2271_v34 = vpop.f32.mrb[7].mxu1 }
 0x267   : > { %v1360_v35 = vadd.f32 %v2221_v27, %v955_v23  ;;  %v1376_v36 = vadd.f32 %v2269_v28, %v971_v25  ;;  %v2224_v37 = vadd.f32 %v2223_v32, %v2222_v29  ;;  %v2272_v38 = vadd.f32 %v2271_v34, %v2270_v30  ;;  %v962_v27 = vld [vmem:[#allocation2 + $0x48] sm:$0xff] }
 0x268   : > { %v978_v29 = vld [vmem:[#allocation2 + $0xc8] sm:$0xff] }
 0x269   : > { %1392 = vst [vmem:[#allocation2 + $0x10] sm:$0xff] %v1360_v35  ;;  %1408 = vst [vmem:[#allocation2 + $0x90] sm:$0xff] %v1376_v36  ;;  %v1361_v39 = vadd.f32 %v2224_v37, %v956_v31  ;;  %v1377_v40 = vadd.f32 %v2272_v38, %v972_v33 }
 0x26b   : > { %1393 = vst [vmem:[#allocation2 + $0x18] sm:$0xff] %v1361_v39  ;;  %1409 = vst [vmem:[#allocation2 + $0x98] sm:$0xff] %v1377_v40  ;;  %v2225_v41 = vpop.f32.mrb[8].mxu0  ;;  %v2273_v42 = vpop.f32.mrb[8].mxu1  ;;  %v963_v39 = vld [vmem:[#allocation2 + $0x50] sm:$0xff] }
 0x26c   : > { %v2226_v44 = vpop.f32.mrb[9].mxu0  ;;  %v2274_v46 = vpop.f32.mrb[9].mxu1 }
 0x26d   : > { %v2227_v47 = vadd.f32 %v2226_v44, %v2225_v41  ;;  %v2275_v48 = vadd.f32 %v2274_v46, %v2273_v42  ;;  %v2228_v49 = vpop.f32.mrb[10].mxu0  ;;  %v2276_v50 = vpop.f32.mrb[10].mxu1  ;;  %v979_v41 = vld [vmem:[#allocation2 + $0xd0] sm:$0xff] }
 0x26e   : > { %v2229_v52 = vpop.f32.mrb[11].mxu0  ;;  %v2277_v54 = vpop.f32.mrb[11].mxu1 }
 0x26f   : > { %v1362_v55 = vadd.f32 %v2227_v47, %v957_v43  ;;  %v1378_v56 = vadd.f32 %v2275_v48, %v973_v45  ;;  %v2230_v57 = vadd.f32 %v2229_v52, %v2228_v49  ;;  %v2278_v58 = vadd.f32 %v2277_v54, %v2276_v50  ;;  %v964_v47 = vld [vmem:[#allocation2 + $0x58] sm:$0xff] }
 0x270   : > { %v980_v49 = vld [vmem:[#allocation2 + $0xd8] sm:$0xff] }
 0x271   : > { %1394 = vst [vmem:[#allocation2 + $0x20] sm:$0xff] %v1362_v55  ;;  %1410 = vst [vmem:[#allocation2 + $0xa0] sm:$0xff] %v1378_v56  ;;  %v1363_v59 = vadd.f32 %v2230_v57, %v958_v51  ;;  %v1379_v60 = vadd.f32 %v2278_v58, %v974_v53 }
 0x273   : > { %1395 = vst [vmem:[#allocation2 + $0x28] sm:$0xff] %v1363_v59  ;;  %1411 = vst [vmem:[#allocation2 + $0xa8] sm:$0xff] %v1379_v60  ;;  %v2231_v61 = vpop.f32.mrb[12].mxu0  ;;  %v2279_v62 = vpop.f32.mrb[12].mxu1  ;;  %v965_v59 = vld [vmem:[#allocation2 + $0x60] sm:$0xff] }
 0x274   : > { %v2232_v0 = vpop.f32.mrb[13].mxu0  ;;  %v2280_v2 = vpop.f32.mrb[13].mxu1 }
 0x275   : > { %v2233_v3 = vadd.f32 %v2232_v0, %v2231_v61  ;;  %v2281_v4 = vadd.f32 %v2280_v2, %v2279_v62  ;;  %v2234_v5 = vpop.f32.mrb[14].mxu0  ;;  %v2282_v6 = vpop.f32.mrb[14].mxu1  ;;  %v981_v61 = vld [vmem:[#allocation2 + $0xe0] sm:$0xff] }
 0x276   : > { %v2235_v8 = vpop.f32.mrb[15].mxu0  ;;  %v2283_v10 = vpop.f32.mrb[15].mxu1 }
 0x277   : > { %v1364_v11 = vadd.f32 %v2233_v3, %v959_v63  ;;  %v1380_v12 = vadd.f32 %v2281_v4, %v975_v1  ;;  %v2236_v13 = vadd.f32 %v2235_v8, %v2234_v5  ;;  %v2284_v14 = vadd.f32 %v2283_v10, %v2282_v6  ;;  %v966_v3 = vld [vmem:[#allocation2 + $0x68] sm:$0xff] }
 0x278   : > { %v982_v5 = vld [vmem:[#allocation2 + $0xe8] sm:$0xff] }
 0x279   : > { %1396 = vst [vmem:[#allocation2 + $0x30] sm:$0xff] %v1364_v11  ;;  %1412 = vst [vmem:[#allocation2 + $0xb0] sm:$0xff] %v1380_v12  ;;  %v1365_v15 = vadd.f32 %v2236_v13, %v960_v7  ;;  %v1381_v16 = vadd.f32 %v2284_v14, %v976_v9 }
 0x27b   : > { %1397 = vst [vmem:[#allocation2 + $0x38] sm:$0xff] %v1365_v15  ;;  %1413 = vst [vmem:[#allocation2 + $0xb8] sm:$0xff] %v1381_v16  ;;  %v2237_v17 = vpop.f32.mrb[16].mxu0  ;;  %v2285_v18 = vpop.f32.mrb[16].mxu1  ;;  %v967_v15 = vld [vmem:[#allocation2 + $0x70] sm:$0xff] }
 0x27c   : > { %v2238_v20 = vpop.f32.mrb[17].mxu0  ;;  %v2286_v22 = vpop.f32.mrb[17].mxu1 }
 0x27d   : > { %v2239_v23 = vadd.f32 %v2238_v20, %v2237_v17  ;;  %v2287_v24 = vadd.f32 %v2286_v22, %v2285_v18  ;;  %v2240_v25 = vpop.f32.mrb[18].mxu0  ;;  %v2288_v26 = vpop.f32.mrb[18].mxu1  ;;  %v983_v17 = vld [vmem:[#allocation2 + $0xf0] sm:$0xff] }
 0x27e   : > { %v2241_v28 = vpop.f32.mrb[19].mxu0  ;;  %v2289_v30 = vpop.f32.mrb[19].mxu1 }
 0x27f   : > { %v1366_v31 = vadd.f32 %v2239_v23, %v961_v19  ;;  %v1382_v32 = vadd.f32 %v2287_v24, %v977_v21  ;;  %v2242_v33 = vadd.f32 %v2241_v28, %v2240_v25  ;;  %v2290_v34 = vadd.f32 %v2289_v30, %v2288_v26  ;;  %v968_v23 = vld [vmem:[#allocation2 + $0x78] sm:$0xff] }
 0x280   : > { %v984_v25 = vld [vmem:[#allocation2 + $0xf8] sm:$0xff] }
 0x281   : > { %1398 = vst [vmem:[#allocation2 + $0x40] sm:$0xff] %v1366_v31  ;;  %1414 = vst [vmem:[#allocation2 + $0xc0] sm:$0xff] %v1382_v32  ;;  %v1367_v35 = vadd.f32 %v2242_v33, %v962_v27  ;;  %v1383_v36 = vadd.f32 %v2290_v34, %v978_v29 }
 0x283   : > { %1399 = vst [vmem:[#allocation2 + $0x48] sm:$0xff] %v1367_v35  ;;  %1415 = vst [vmem:[#allocation2 + $0xc8] sm:$0xff] %v1383_v36  ;;  %v2243_v37 = vpop.f32.mrb[20].mxu0  ;;  %v2291_v38 = vpop.f32.mrb[20].mxu1 }
 0x284   : > { %v2244_v40 = vpop.f32.mrb[21].mxu0  ;;  %v2292_v42 = vpop.f32.mrb[21].mxu1 }
 0x285   : > { %v2245_v43 = vadd.f32 %v2244_v40, %v2243_v37  ;;  %v2293_v44 = vadd.f32 %v2292_v42, %v2291_v38  ;;  %v2246_v45 = vpop.f32.mrb[22].mxu0  ;;  %v2294_v46 = vpop.f32.mrb[22].mxu1 }
 0x286   : > { %v2247_v48 = vpop.f32.mrb[23].mxu0  ;;  %v2295_v50 = vpop.f32.mrb[23].mxu1 }
 0x287   : > { %v1368_v51 = vadd.f32 %v2245_v43, %v963_v39  ;;  %v1384_v52 = vadd.f32 %v2293_v44, %v979_v41  ;;  %v2248_v53 = vadd.f32 %v2247_v48, %v2246_v45  ;;  %v2296_v54 = vadd.f32 %v2295_v50, %v2294_v46 }
 0x289   : > { %1400 = vst [vmem:[#allocation2 + $0x50] sm:$0xff] %v1368_v51  ;;  %1416 = vst [vmem:[#allocation2 + $0xd0] sm:$0xff] %v1384_v52  ;;  %v1369_v55 = vadd.f32 %v2248_v53, %v964_v47  ;;  %v1385_v56 = vadd.f32 %v2296_v54, %v980_v49 }
 0x28b   : > { %1401 = vst [vmem:[#allocation2 + $0x58] sm:$0xff] %v1369_v55  ;;  %1417 = vst [vmem:[#allocation2 + $0xd8] sm:$0xff] %v1385_v56  ;;  %v2249_v57 = vpop.f32.mrb[24].mxu0  ;;  %v2297_v58 = vpop.f32.mrb[24].mxu1 }
 0x28c   : > { %v2250_v60 = vpop.f32.mrb[25].mxu0  ;;  %v2298_v62 = vpop.f32.mrb[25].mxu1 }
 0x28d   : > { %v2251_v63 = vadd.f32 %v2250_v60, %v2249_v57  ;;  %v2299_v0 = vadd.f32 %v2298_v62, %v2297_v58  ;;  %v2252_v1 = vpop.f32.mrb[26].mxu0  ;;  %v2300_v2 = vpop.f32.mrb[26].mxu1 }
 0x28e   : > { %v2253_v4 = vpop.f32.mrb[27].mxu0  ;;  %v2301_v6 = vpop.f32.mrb[27].mxu1 }
 0x28f   : > { %v1370_v7 = vadd.f32 %v2251_v63, %v965_v59  ;;  %v1386_v8 = vadd.f32 %v2299_v0, %v981_v61  ;;  %v2254_v9 = vadd.f32 %v2253_v4, %v2252_v1  ;;  %v2302_v10 = vadd.f32 %v2301_v6, %v2300_v2 }
 0x291   : > { %1402 = vst [vmem:[#allocation2 + $0x60] sm:$0xff] %v1370_v7  ;;  %1418 = vst [vmem:[#allocation2 + $0xe0] sm:$0xff] %v1386_v8  ;;  %v1371_v11 = vadd.f32 %v2254_v9, %v966_v3  ;;  %v1387_v12 = vadd.f32 %v2302_v10, %v982_v5 }
 0x293   : > { %1403 = vst [vmem:[#allocation2 + $0x68] sm:$0xff] %v1371_v11  ;;  %1419 = vst [vmem:[#allocation2 + $0xe8] sm:$0xff] %v1387_v12  ;;  %v2255_v13 = vpop.f32.mrb[28].mxu0  ;;  %v2303_v14 = vpop.f32.mrb[28].mxu1 }
 0x294   : > { %v2256_v16 = vpop.f32.mrb[29].mxu0  ;;  %v2304_v18 = vpop.f32.mrb[29].mxu1 }
 0x295   : > { %v2257_v19 = vadd.f32 %v2256_v16, %v2255_v13  ;;  %v2305_v20 = vadd.f32 %v2304_v18, %v2303_v14  ;;  %v2258_v21 = vpop.f32.mrb[30].mxu0  ;;  %v2306_v22 = vpop.f32.mrb[30].mxu1 }
 0x296   : > { %v2259_v24 = vpop.f32.mrb[31].mxu0  ;;  %v2307_v26 = vpop.f32.mrb[31].mxu1 }
 0x297   : > { %v1372_v27 = vadd.f32 %v2257_v19, %v967_v15  ;;  %v1388_v28 = vadd.f32 %v2305_v20, %v983_v17  ;;  %v2260_v29 = vadd.f32 %v2259_v24, %v2258_v21  ;;  %v2308_v30 = vadd.f32 %v2307_v26, %v2306_v22 }
 0x299   : > { %1404 = vst [vmem:[#allocation2 + $0x70] sm:$0xff] %v1372_v27  ;;  %1420 = vst [vmem:[#allocation2 + $0xf0] sm:$0xff] %v1388_v28  ;;  %v1373_v31 = vadd.f32 %v2260_v29, %v968_v23  ;;  %v1389_v32 = vadd.f32 %v2308_v30, %v984_v25 }
 0x29b   : > { %1405 = vst [vmem:[#allocation2 + $0x78] sm:$0xff] %v1373_v31  ;;  %1421 = vst [vmem:[#allocation2 + $0xf8] sm:$0xff] %v1389_v32 }
 0x29c PF: > { %v1425_v33 = vld [vmem:[#allocation2] sm:$0xff]  ;;  %v1426_v34 = vld [vmem:[#allocation2 + $0x8] sm:$0xff]  ;;  %v1427_v35 = vld [vmem:[#allocation2 + $0x10] sm:$0xff]  ;;  %p2065_p12 = scmp.ge.s32.totalorder %s2588_s25, 2 }
 0x29d   : > { %v1428_v36 = vld [vmem:[#allocation2 + $0x18] sm:$0xff]  ;;  %v1429_v37 = vld [vmem:[#allocation2 + $0x20] sm:$0xff]  ;;  %v1430_v38 = vld [vmem:[#allocation2 + $0x28] sm:$0xff]  ;;  %s1773_s30 = sadd.s32 (!%p2065_p12), 1, %s2588_s25 }
 0x29e   : > { %v1431_v39 = vld [vmem:[#allocation2 + $0x30] sm:$0xff]  ;;  %v1432_v40 = vld [vmem:[#allocation2 + $0x38] sm:$0xff]  ;;  %v1433_v41 = vld [vmem:[#allocation2 + $0x40] sm:$0xff]  ;;  %p1774_p13 = scmp.lt.s32.totalorder (!%p2065_p12), %s1773_s30, 0 }
 0x29f   : > { %v1434_v42 = vld [vmem:[#allocation2 + $0x48] sm:$0xff]  ;;  %v1435_v43 = vld [vmem:[#allocation2 + $0x50] sm:$0xff]  ;;  %v1436_v44 = vld [vmem:[#allocation2 + $0x58] sm:$0xff] }
 0x2a0   : > { %v1437_v45 = vld [vmem:[#allocation2 + $0x60] sm:$0xff]  ;;  %v1438_v46 = vld [vmem:[#allocation2 + $0x68] sm:$0xff]  ;;  %v1439_v47 = vld [vmem:[#allocation2 + $0x70] sm:$0xff] }
 0x2a1   : > { %v1441_v49 = vld [vmem:[#allocation2 + $0x80] sm:$0xff]  ;;  %v1442_v51 = vld [vmem:[#allocation2 + $0x88] sm:$0xff]  ;;  %v1443_v52 = vld [vmem:[#allocation2 + $0x90] sm:$0xff] }
 0x2a2   : > { %v1440_v48 = vld [vmem:[#allocation2 + $0x78] sm:$0xff]  ;;  %v2064_v50 = vld [vmem:[%s298_s9] ss:$0 sm:$0xff]  ;;  %v1446_v59 = vld [vmem:[#allocation2 + $0xa8] sm:$0xff]  ;;  %s1775_s9 = ssub.s32 (!%p2065_p12), 0, %s1773_s30 }
 0x2a3   : > { %v1444_v53 = vld [vmem:[#allocation2 + $0x98] sm:$0xff]  ;;  %v2809_v54 = vadd.f32 %v2064_v50, %v1425_v33  ;;  %v2811_v55 = vadd.f32 %v2064_v50, %v1426_v34  ;;  %v2813_v56 = vadd.f32 %v2064_v50, %v1427_v35  ;;  %v2815_v57 = vadd.f32 %v2064_v50, %v1428_v36  ;;  %v1445_v58 = vld [vmem:[#allocation2 + $0xa0] sm:$0xff]  ;;  %v1447_v60 = vld [vmem:[#allocation2 + $0xb0] sm:$0xff] }
 0x2a4   : > { %v2817_v61 = vadd.f32 %v2064_v50, %v1429_v37  ;;  %v2819_v62 = vadd.f32 %v2064_v50, %v1430_v38  ;;  %v2821_v63 = vadd.f32 %v2064_v50, %v1431_v39  ;;  %v2823_v0 = vadd.f32 %v2064_v50, %v1432_v40  ;;  %v1448_v1 = vld [vmem:[#allocation2 + $0xb8] sm:$0xff]  ;;  %v1449_v2 = vld [vmem:[#allocation2 + $0xc0] sm:$0xff]  ;;  %v1450_v3 = vld [vmem:[#allocation2 + $0xc8] sm:$0xff]  ;;  %1499 = sbr.rel (%p2065_p12) target bundleno = 956 (0x3bc), region = 60 }
 0x2a5   : > { %v2825_v4 = vadd.f32 %v2064_v50, %v1433_v41  ;;  %v2827_v5 = vadd.f32 %v2064_v50, %v1434_v42  ;;  %v2829_v6 = vadd.f32 %v2064_v50, %v1435_v43  ;;  %v2831_v7 = vadd.f32 %v2064_v50, %v1436_v44  ;;  %v1451_v8 = vld [vmem:[#allocation2 + $0xd0] sm:$0xff]  ;;  %v1452_v9 = vld [vmem:[#allocation2 + $0xd8] sm:$0xff]  ;;  %v1453_v10 = vld [vmem:[#allocation2 + $0xe0] sm:$0xff] }
 0x2a6   : > { %v2833_v11 = vadd.f32 %v2064_v50, %v1437_v45  ;;  %v2835_v12 = vadd.f32 %v2064_v50, %v1438_v46  ;;  %v2837_v13 = vadd.f32 %v2064_v50, %v1439_v47  ;;  %v2839_v14 = vadd.f32 %v2064_v50, %v1440_v48  ;;  %v1454_v15 = vld [vmem:[#allocation2 + $0xe8] sm:$0xff]  ;;  %v1455_v16 = vld [vmem:[#allocation2 + $0xf0] sm:$0xff]  ;;  %v1456_v17 = vld [vmem:[#allocation2 + $0xf8] sm:$0xff] }
 0x2a7   : > { %v2841_v18 = vadd.f32 %v2064_v50, %v1441_v49  ;;  %v2843_v19 = vadd.f32 %v2064_v50, %v1442_v51  ;;  %v2845_v20 = vadd.f32 %v2064_v50, %v1443_v52  ;;  %v2847_v21 = vadd.f32 %v2064_v50, %v1444_v53  ;;  %v2566_v34 = vld [vmem:[%s2682_s14] sm:$0xff] (!%p2065_p12)   ;;  %v2567_v36 = vld [vmem:[%s2682_s14 + $0x8] sm:$0xff] (!%p2065_p12)   ;;  %v2568_v41 = vld [vmem:[%s2682_s14 + $0x10] sm:$0xff] (!%p2065_p12)  }
 0x2a8   : > { %v2849_v22 = vadd.f32 %v2064_v50, %v1445_v58  ;;  %v2851_v23 = vadd.f32 %v2064_v50, %v1446_v59  ;;  %v2853_v24 = vadd.f32 %v2064_v50, %v1447_v60  ;;  %v2855_v25 = vadd.f32 %v2064_v50, %v1448_v1  ;;  %2333 = vmatprep.subr.bf16.mxu0 (!%p2065_p12), %v2566_v34  ;;  %v2569_v43 = vld [vmem:[%s2682_s14 + $0x18] sm:$0xff] (!%p2065_p12)   ;;  %v2570_v44 = vld [vmem:[%s2682_s14 + $0x20] sm:$0xff] (!%p2065_p12)   ;;  %v2571_v45 = vld [vmem:[%s2682_s14 + $0x28] sm:$0xff] (!%p2065_p12)  }
 0x2a9   : > { %v2857_v26 = vadd.f32 %v2064_v50, %v1449_v2  ;;  %v2859_v27 = vadd.f32 %v2064_v50, %v1450_v3  ;;  %v2861_v28 = vadd.f32 %v2064_v50, %v1451_v8  ;;  %v2863_v29 = vadd.f32 %v2064_v50, %v1452_v9  ;;  %2413 = vmatprep.subr.bf16.mxu1 (!%p2065_p12), %v2566_v34  ;;  %v2572_v46 = vld [vmem:[%s2682_s14 + $0x30] sm:$0xff] (!%p2065_p12)   ;;  %v2573_v47 = vld [vmem:[%s2682_s14 + $0x38] sm:$0xff] (!%p2065_p12)   ;;  %s2074_s14 = smin.u32 (!%p2065_p12), %s1775_s9, %s1773_s30 }
 0x2aa   : > { %v2865_v30 = vadd.f32 %v2064_v50, %v1453_v10  ;;  %v2867_v31 = vadd.f32 %v2064_v50, %v1454_v15  ;;  %v2869_v32 = vadd.f32 %v2064_v50, %v1455_v16  ;;  %v2871_v33 = vadd.f32 %v2064_v50, %v1456_v17  ;;  %2334 = vmatpush3.bf16.msra.mxu0 (!%p2065_p12), %v2566_v34  ;;  %s1777_s19 = sand.u32 (!%p2065_p12), 1, %s2074_s14  }
 0x2ab   : > { %v1500_v35 = vmax.f32 %v2809_v54, 0.0  ;;  %v1501_v37 = vmax.f32 %v2811_v55, 0.0  ;;  %v1516_v38 = vmax.f32 %v2841_v18, 0.0  ;;  %2421 = vmatpush3.bf16.msra.mxu1 %v2566_v34  ;;  %v1517_v40 = vmax.f32 %v2843_v19, 0.0  ;;  %2335 = vmatprep.subr.bf16.mxu0 %v2567_v36  ;;  %s1778_s20 = ssub.s32 0, %s1777_s19 }
 0x2ac   : > { %2414 = vmatprep.subr.bf16.mxu1 %v2567_v36  ;;  %v1502_v48 = vmax.f32 %v2813_v56, 0.0  ;;  %v1503_v49 = vmax.f32 %v2815_v57, 0.0  ;;  %v1518_v50 = vmax.f32 %v2845_v20, 0.0  ;;  %v1519_v51 = vmax.f32 %v2847_v21, 0.0  ;;  %s3091_s20 = smov (!%p1774_p13, %s1778_s20), %s1777_s19 }
 0x2ad   : > { %v1532_v39 = vpack.c.bf16 %v1501_v37, %v1500_v35  ;;  %v1540_v42 = vpack.c.bf16 %v1517_v40, %v1516_v38  ;;  %v1504_v52 = vmax.f32 %v2817_v61, 0.0  ;;  %v1505_v53 = vmax.f32 %v2819_v62, 0.0  ;;  %p2076_p0 = scmp.lt.s32.totalorder %s3091_s20, 0  ;;  %s1784_s21 = sadd.s32 2, %s3091_s20 }
 0x2ae   : > { %2336 = vmatpush3.bf16.msra.mxu0 %v2567_v36  ;;  %v1520_v58 = vmax.f32 %v2849_v22, 0.0  ;;  %v1521_v59 = vmax.f32 %v2851_v23, 0.0  ;;  %v1533_v60 = vpack.c.bf16 %v1503_v49, %v1502_v48  ;;  %v1541_v1 = vpack.c.bf16 %v1519_v51, %v1518_v50 }
 0x2af   : > { %2349 = vmatprep.mubr.bf16.mxu0 %v1532_v39  ;;  %2422 = vmatpush3.bf16.msra.mxu1 %v2567_v36  ;;  %v1534_v2 = vpack.c.bf16 %v1505_v53, %v1504_v52  ;;  %v1506_v8 = vmax.f32 %v2821_v63, 0.0  ;;  %v1507_v9 = vmax.f32 %v2823_v0, 0.0  ;;  %v1522_v10 = vmax.f32 %v2853_v24, 0.0  ;;  %s3093_s21 = smov (!%p2076_p0, %s1784_s21), %s3091_s20 }
 0x2b0   : > { %2337 = vmatprep.subr.bf16.mxu0 %v2568_v41  ;;  %2415 = vmatprep.subr.bf16.mxu1 %v2568_v41  ;;  %v1542_v3 = vpack.c.bf16 %v1521_v59, %v1520_v58  ;;  %v1523_v15 = vmax.f32 %v2855_v25, 0.0  ;;  %v1508_v16 = vmax.f32 %v2825_v4, 0.0  ;;  %v1509_v17 = vmax.f32 %v2827_v5, 0.0  ;;  %s2077_s22 = sshll.u32 %s3093_s21, 8 }
 0x2b1   : > { %2365 = vmatprep.mubr.bf16.mxu1 %v1540_v42  ;;  %v1524_v34 = vmax.f32 %v2857_v26, 0.0  ;;  %v1525_v35 = vmax.f32 %v2859_v27, 0.0  ;;  %v1535_v36 = vpack.c.bf16 %v1507_v9, %v1506_v8  ;;  %v1510_v40 = vmax.f32 %v2829_v6, 0.0  ;;  %s1805_s23 = sshra.s32 %s2077_s22, 4 }
 0x2b2   : > { %2338 = vmatpush3.bf16.msra.mxu0 %v2568_v41  ;;  %v1543_v37 = vpack.c.bf16 %v1523_v15, %v1522_v10  ;;  %v1536_v38 = vpack.c.bf16 %v1509_v17, %v1508_v16  ;;  %v1526_v42 = vmax.f32 %v2861_v28, 0.0  ;;  %v1514_v52 = vmax.f32 %v2837_v13, 0.0  ;;  %s2078_s24 = sshll.u32 %s1805_s23, 3 }
 0x2b3   : > { %2423 = vmatpush3.bf16.msra.mxu1 %v2568_v41  ;;  %2339 = vmatprep.subr.bf16.mxu0 %v2569_v43  ;;  %v1544_v39 = vpack.c.bf16 %v1525_v35, %v1524_v34  ;;  %v1511_v41 = vmax.f32 %v2831_v7, 0.0  ;;  %v1515_v53 = vmax.f32 %v2839_v14, 0.0  ;;  %v1530_v58 = vmax.f32 %v2869_v32, 0.0  ;;  %s2915_s1 = scalar_lea.vmem [#allocation3], %s2078_s24 }
 0x2b4   : > { %2416 = vmatprep.subr.bf16.mxu1 %v2569_v43  ;;  %v1531_v59 = vmax.f32 %v2871_v33, 0.0 }
 0x2b5   : > { %v1537_v48 = vpack.c.bf16 %v1511_v41, %v1510_v40 }
 0x2b6   : > { %2340 = vmatpush3.bf16.msra.mxu0 %v2569_v43 }
 0x2b7   : > { %2424 = vmatpush3.bf16.msra.mxu1 %v2569_v43  ;;  %2341 = vmatprep.subr.bf16.mxu0 %v2570_v44  ;;  %v1527_v43 = vmax.f32 %v2863_v29, 0.0 }
 0x2b8   : > { %2417 = vmatprep.subr.bf16.mxu1 %v2570_v44 }
 0x2b9   : > { %v1545_v49 = vpack.c.bf16 %v1527_v43, %v1526_v42 }
 0x2ba   : > { %2342 = vmatpush3.bf16.msra.mxu0 %v2570_v44 }
 0x2bb   : > { %2425 = vmatpush3.bf16.msra.mxu1 %v2570_v44  ;;  %2343 = vmatprep.subr.bf16.mxu0 %v2571_v45  ;;  %v1512_v44 = vmax.f32 %v2833_v11, 0.0 }
 0x2bc   : > { %2418 = vmatprep.subr.bf16.mxu1 %v2571_v45 }
 0x2be   : > { %2344 = vmatpush3.bf16.msra.mxu0 %v2571_v45 }
 0x2bf   : > { %2426 = vmatpush3.bf16.msra.mxu1 %v2571_v45  ;;  %2345 = vmatprep.subr.bf16.mxu0 %v2572_v46  ;;  %v1513_v45 = vmax.f32 %v2835_v12, 0.0 }
 0x2c0   : > { %2419 = vmatprep.subr.bf16.mxu1 %v2572_v46 }
 0x2c1   : > { %v1538_v50 = vpack.c.bf16 %v1513_v45, %v1512_v44 }
 0x2c2   : > { %2346 = vmatpush3.bf16.msra.mxu0 %v2572_v46 }
 0x2c3   : > { %2427 = vmatpush3.bf16.msra.mxu1 %v2572_v46  ;;  %2347 = vmatprep.subr.bf16.mxu0 %v2573_v47  ;;  %v1528_v46 = vmax.f32 %v2865_v30, 0.0 }
 0x2c4   : > { %2420 = vmatprep.subr.bf16.mxu1 %v2573_v47 }
 0x2c6   : > { %2348 = vmatpush3.bf16.msra.mxu0 %v2573_v47 }
 0x2c7   : > { %2428 = vmatpush3.bf16.msra.mxu1 %v2573_v47  ;;  %v1529_v47 = vmax.f32 %v2867_v31, 0.0 }
 0x2c9   : > { %2350 = vmatmul.mubr.bf16.vlgmr.msra.gmra.mrb[0].mxu0 %v1533_v60  ;;  %v1546_v51 = vpack.c.bf16 %v1529_v47, %v1528_v46  ;;  %v1539_v60 = vpack.c.bf16 %v1515_v53, %v1514_v52 }
 0x2ca   : > { %2366 = vmatmul.mubr.bf16.vlgmr.msra.gmra.mrb[0].mxu1 %v1541_v1  ;;  %2353 = vmatprep.mubr.bf16.mxu0 %v1534_v2  ;;  %v1547_v1 = vpack.c.bf16 %v1531_v59, %v1530_v58 }
 0x2cb   : > { %2369 = vmatprep.mubr.bf16.mxu1 %v1542_v3 }
 0x2d1   : > { %2354 = vmatmul.mubr.bf16.gmra.mrb[4].mxu0 %v1535_v36 }
 0x2d2   : > { %2370 = vmatmul.mubr.bf16.gmra.mrb[4].mxu1 %v1543_v37  ;;  %2357 = vmatprep.mubr.bf16.mxu0 %v1536_v38 }
 0x2d3   : > { %2373 = vmatprep.mubr.bf16.mxu1 %v1544_v39 }
 0x2d9   : > { %2358 = vmatmul.mubr.bf16.gmra.mrb[8].mxu0 %v1537_v48 }
 0x2da   : > { %2374 = vmatmul.mubr.bf16.gmra.mrb[8].mxu1 %v1545_v49  ;;  %2361 = vmatprep.mubr.bf16.mxu0 %v1538_v50 }
 0x2db   : > { %2377 = vmatprep.mubr.bf16.mxu1 %v1546_v51 }
 0x2e1   : > { %2362 = vmatmul.mubr.bf16.gmra.mrb[12].mxu0 %v1539_v60 }
 0x2e2   : > { %2378 = vmatmul.mubr.bf16.gmra.mrb[12].mxu1 %v1547_v1 }
 0x39c   : > { %v2351_v2 = vpop.f32.mrb[0].mxu0 }
 0x39d   : > { %v2367_v3 = vpop.f32.mrb[0].mxu1  ;;  %v1646_v8 = vpop.f32.mrb[1].mxu0 }
 0x39e   : > { %v1710_v9 = vpop.f32.mrb[1].mxu1  ;;  %v2352_v10 = vpop.f32.mrb[2].mxu0 }
 0x39f   : > { %v2368_v15 = vpop.f32.mrb[2].mxu1  ;;  %v1790_v16 = vpack.c.bf16 %v2352_v10, %v2351_v2  ;;  %v1649_v34 = vpop.f32.mrb[3].mxu0 }
 0x3a0   : > { %v1798_v17 = vpack.c.bf16 %v2368_v15, %v2367_v3  ;;  %v1713_v35 = vpop.f32.mrb[3].mxu1  ;;  %v1789_v36 = vpack.c.bf16 %v1649_v34, %v1646_v8 }
 0x3a1   : > { %v1797_v37 = vpack.c.bf16 %v1713_v35, %v1710_v9  ;;  %1810 = vst [vmem:[%s2915_s1 + $0x8] sm:$0xff] %v1790_v16 }
 0x3a2   : > { %1818 = vst [vmem:[%s2915_s1 + $0x48] sm:$0xff] %v1798_v17  ;;  %1809 = vst [vmem:[%s2915_s1] sm:$0xff] %v1789_v36 }
 0x3a3   : > { %1817 = vst [vmem:[%s2915_s1 + $0x40] sm:$0xff] %v1797_v37 }
 0x3a4   : > { %v2355_v38 = vpop.f32.mrb[4].mxu0 }
 0x3a5   : > { %v2371_v39 = vpop.f32.mrb[4].mxu1  ;;  %v1662_v40 = vpop.f32.mrb[5].mxu0 }
 0x3a6   : > { %v1726_v41 = vpop.f32.mrb[5].mxu1  ;;  %v2356_v42 = vpop.f32.mrb[6].mxu0 }
 0x3a7   : > { %v2372_v43 = vpop.f32.mrb[6].mxu1  ;;  %v1792_v44 = vpack.c.bf16 %v2356_v42, %v2355_v38  ;;  %v1665_v46 = vpop.f32.mrb[7].mxu0 }
 0x3a8   : > { %v1800_v45 = vpack.c.bf16 %v2372_v43, %v2371_v39  ;;  %v1729_v47 = vpop.f32.mrb[7].mxu1  ;;  %v1791_v48 = vpack.c.bf16 %v1665_v46, %v1662_v40 }
 0x3a9   : > { %v1799_v49 = vpack.c.bf16 %v1729_v47, %v1726_v41  ;;  %1812 = vst [vmem:[%s2915_s1 + $0x18] sm:$0xff] %v1792_v44 }
 0x3aa   : > { %1820 = vst [vmem:[%s2915_s1 + $0x58] sm:$0xff] %v1800_v45  ;;  %1811 = vst [vmem:[%s2915_s1 + $0x10] sm:$0xff] %v1791_v48 }
 0x3ab   : > { %1819 = vst [vmem:[%s2915_s1 + $0x50] sm:$0xff] %v1799_v49 }
 0x3ac   : > { %v2359_v50 = vpop.f32.mrb[8].mxu0 }
 0x3ad   : > { %v2375_v51 = vpop.f32.mrb[8].mxu1  ;;  %v1678_v52 = vpop.f32.mrb[9].mxu0 }
 0x3ae   : > { %v1742_v53 = vpop.f32.mrb[9].mxu1  ;;  %v2360_v58 = vpop.f32.mrb[10].mxu0 }
 0x3af   : > { %v2376_v59 = vpop.f32.mrb[10].mxu1  ;;  %v1794_v60 = vpack.c.bf16 %v2360_v58, %v2359_v50  ;;  %v1681_v2 = vpop.f32.mrb[11].mxu0 }
 0x3b0   : > { %v1802_v1 = vpack.c.bf16 %v2376_v59, %v2375_v51  ;;  %v1745_v3 = vpop.f32.mrb[11].mxu1  ;;  %v1793_v8 = vpack.c.bf16 %v1681_v2, %v1678_v52 }
 0x3b1   : > { %v1801_v9 = vpack.c.bf16 %v1745_v3, %v1742_v53  ;;  %1814 = vst [vmem:[%s2915_s1 + $0x28] sm:$0xff] %v1794_v60 }
 0x3b2   : > { %1822 = vst [vmem:[%s2915_s1 + $0x68] sm:$0xff] %v1802_v1  ;;  %1813 = vst [vmem:[%s2915_s1 + $0x20] sm:$0xff] %v1793_v8 }
 0x3b3   : > { %1821 = vst [vmem:[%s2915_s1 + $0x60] sm:$0xff] %v1801_v9 }
 0x3b4   : > { %v2363_v10 = vpop.f32.mrb[12].mxu0 }
 0x3b5   : > { %v2379_v15 = vpop.f32.mrb[12].mxu1  ;;  %v1694_v16 = vpop.f32.mrb[13].mxu0 }
 0x3b6   : > { %v1758_v17 = vpop.f32.mrb[13].mxu1  ;;  %v2364_v34 = vpop.f32.mrb[14].mxu0 }
 0x3b7   : > { %v2380_v35 = vpop.f32.mrb[14].mxu1  ;;  %v1796_v36 = vpack.c.bf16 %v2364_v34, %v2363_v10  ;;  %v1697_v38 = vpop.f32.mrb[15].mxu0 }
 0x3b8   : > { %v1804_v37 = vpack.c.bf16 %v2380_v35, %v2379_v15  ;;  %v1761_v39 = vpop.f32.mrb[15].mxu1  ;;  %v1795_v40 = vpack.c.bf16 %v1697_v38, %v1694_v16 }
 0x3b9   : > { %v1803_v41 = vpack.c.bf16 %v1761_v39, %v1758_v17  ;;  %1816 = vst [vmem:[%s2915_s1 + $0x38] sm:$0xff] %v1796_v36 }
 0x3ba   : > { %1824 = vst [vmem:[%s2915_s1 + $0x78] sm:$0xff] %v1804_v37  ;;  %1815 = vst [vmem:[%s2915_s1 + $0x30] sm:$0xff] %v1795_v40 }
 0x3bb   : > { %1823 = vst [vmem:[%s2915_s1 + $0x70] sm:$0xff] %v1803_v41 }
 0x3bc PF: > { %p2079_p1 = scmp.ne.s32.totalorder %s2588_s25, 2 }
 0x3bd   : > { %1829 = vst [vmem:[%s3077_s6] sm:$0xff] (!%p2079_p1), %v2809_v54  ;;  %1830 = vst [vmem:[%s3077_s6 + $0x8] sm:$0xff] (!%p2079_p1), %v2811_v55 }
 0x3be   : > { %1828 = sbr.rel (%p2079_p1) target bundleno = 973 (0x3cd), region = 64  ;;  %1831 = vst [vmem:[%s3077_s6 + $0x10] sm:$0xff] (!%p2079_p1), %v2813_v56  ;;  %1832 = vst [vmem:[%s3077_s6 + $0x18] sm:$0xff] (!%p2079_p1), %v2815_v57 }
 0x3bf   : > { %1833 = vst [vmem:[%s3077_s6 + $0x20] sm:$0xff] (!%p2079_p1), %v2817_v61  ;;  %1834 = vst [vmem:[%s3077_s6 + $0x28] sm:$0xff] (!%p2079_p1), %v2819_v62 }
 0x3c0   : > { %1835 = vst [vmem:[%s3077_s6 + $0x30] sm:$0xff] (!%p2079_p1), %v2821_v63  ;;  %1836 = vst [vmem:[%s3077_s6 + $0x38] sm:$0xff] (!%p2079_p1), %v2823_v0 }
 0x3c1   : > { %1837 = vst [vmem:[%s3077_s6 + $0x40] sm:$0xff] (!%p2079_p1), %v2825_v4  ;;  %1838 = vst [vmem:[%s3077_s6 + $0x48] sm:$0xff] (!%p2079_p1), %v2827_v5 }
 0x3c2   : > { %1839 = vst [vmem:[%s3077_s6 + $0x50] sm:$0xff] (!%p2079_p1), %v2829_v6  ;;  %1840 = vst [vmem:[%s3077_s6 + $0x58] sm:$0xff] (!%p2079_p1), %v2831_v7 }
 0x3c3   : > { %1841 = vst [vmem:[%s3077_s6 + $0x60] sm:$0xff] (!%p2079_p1), %v2833_v11  ;;  %1842 = vst [vmem:[%s3077_s6 + $0x68] sm:$0xff] (!%p2079_p1), %v2835_v12 }
 0x3c4   : > { %1843 = vst [vmem:[%s3077_s6 + $0x70] sm:$0xff] (!%p2079_p1), %v2837_v13  ;;  %1844 = vst [vmem:[%s3077_s6 + $0x78] sm:$0xff] (!%p2079_p1), %v2839_v14 }
 0x3c5   : > { %1845 = vst [vmem:[%s3077_s6 + $0x80] sm:$0xff] %v2841_v18  ;;  %1846 = vst [vmem:[%s3077_s6 + $0x88] sm:$0xff] %v2843_v19 }
 0x3c6   : > { %1847 = vst [vmem:[%s3077_s6 + $0x90] sm:$0xff] %v2845_v20  ;;  %1848 = vst [vmem:[%s3077_s6 + $0x98] sm:$0xff] %v2847_v21 }
 0x3c7   : > { %1849 = vst [vmem:[%s3077_s6 + $0xa0] sm:$0xff] %v2849_v22  ;;  %1850 = vst [vmem:[%s3077_s6 + $0xa8] sm:$0xff] %v2851_v23 }
 0x3c8   : > { %1851 = vst [vmem:[%s3077_s6 + $0xb0] sm:$0xff] %v2853_v24  ;;  %1852 = vst [vmem:[%s3077_s6 + $0xb8] sm:$0xff] %v2855_v25 }
 0x3c9   : > { %1853 = vst [vmem:[%s3077_s6 + $0xc0] sm:$0xff] %v2857_v26  ;;  %1854 = vst [vmem:[%s3077_s6 + $0xc8] sm:$0xff] %v2859_v27 }
 0x3ca   : > { %1855 = vst [vmem:[%s3077_s6 + $0xd0] sm:$0xff] %v2861_v28  ;;  %1856 = vst [vmem:[%s3077_s6 + $0xd8] sm:$0xff] %v2863_v29 }
 0x3cb   : > { %1857 = vst [vmem:[%s3077_s6 + $0xe0] sm:$0xff] %v2865_v30  ;;  %1858 = vst [vmem:[%s3077_s6 + $0xe8] sm:$0xff] %v2867_v31 }
 0x3cc   : > { %1859 = vst [vmem:[%s3077_s6 + $0xf0] sm:$0xff] %v2869_v32  ;;  %1860 = vst [vmem:[%s3077_s6 + $0xf8] sm:$0xff] %v2871_v33 }
 0x3cd PF: > { %s18_s27 = sadd.s32 1, %s2596_s27   ;;  %s3078_s25 = smov %s2592_s26 }
 0x3ce   : > { %p15_p2 = scmp.ge.s32.totalorder %s18_s27, 5   ;;  %s3079_s26 = smov %s3081_s0 }
 0x3d0   :  { %17 = sbr.rel (!%p15_p2) target bundleno = 3 (0x3), region = 103 }

</bundles_post_ra>
